<compile_context>
chip_gen: v7x
topology: tpu7x:2x2x1
jax: 0.10.0
libtpu: 0.0.40
codegen_flags: <defaults>
</compile_context>

<pallas_src>
import functools

import numpy as np
import jax
import jax.numpy as jnp
from jax.experimental import pallas as pl
from jax.experimental.pallas import tpu as pltpu

LANE = 128  # TPU vreg lane width; the feature slab (z1|z2|pad) lives in one 128-lane vreg.


# ----------------------------------------------------------------------------
# Fused Pallas kernel (pipelined over blocks of images)
# ----------------------------------------------------------------------------

def fused_protonet_kernel(patches_ref, convw_ref, convb_ref, linw_ref,
                          linb_ref, avg_ref, out_ref, z1_acc_ref, *,
                          n_support, hw, imgs_per_block):
    """Per grid step: conv+ReLU+GAP for `imgs_per_block` images -> z1 scratch.
    Last step: linear layer, concat-via-add, prototypes, -||zq - proto||^2.

    patches_ref: (ipb*HW, CKK) bf16   im2col patches for this image block
    convw_ref  : (CKK, 128)   bf16    conv weight, real lanes [:F1]
    convb_ref  : (1, 128)     f32     conv bias, real lanes [:F1]
    linw_ref   : (128, 128)   bf16    linear weight, real block [:F1, F1:F1+D2]
    linb_ref   : (1, 128)     f32     linear bias, real lanes [F1:F1+D2]
    avg_ref    : (n_way, Ns)  f32     per-class averaging matrix
    out_ref    : (Nq, n_way)  f32     scores
    z1_acc_ref : (Nall, 128)  f32     persistent VMEM scratch for z1
    """
    r = pl.program_id(0)

    # Conv (im2col) as one bf16 MXU matmul for this block, f32 accumulation,
    # then bias + ReLU on the VPU.  Lanes [F1:] stay exactly zero.
    y = jnp.dot(patches_ref[...], convw_ref[...],
                preferred_element_type=jnp.float32)          # (ipb*HW, 128) f32
    y = jnp.maximum(y + convb_ref[...], 0.0)

    # Global average pool: split the major dim per image and reduce over HW
    # in VMEM (no dense block-diagonal GAP matrix / wasted MXU MACs).
    z1 = jnp.mean(y.reshape(imgs_per_block, hw, LANE), axis=1)   # (ipb, 128)

    start = pl.multiple_of(r * imgs_per_block, imgs_per_block)
    z1_acc_ref[pl.ds(start, imgs_per_block), :] = z1

    # Linear layer + ProtoNet head once every image block has been reduced.
    @pl.when(r == pl.num_programs(0) - 1)
    def _():
        z1_all = z1_acc_ref[...]                                 # (Nall, 128) f32
        z2 = jnp.dot(z1_all.astype(jnp.bfloat16), linw_ref[...],
                     preferred_element_type=jnp.float32) + linb_ref[...]
        # torch.cat([z1, z2], -1): z2 was pre-shifted into lanes [F1:F1+D2],
        # so the concat is an add of disjoint lanes; lanes [F1+D2:] stay zero.
        feat = z1_all + z2                                       # (Nall, 128)
        zs = feat[:n_support]
        zq = feat[n_support:]

        # Class prototypes = per-class mean of support embeddings (tiny f32 matmul).
        protos = jnp.dot(avg_ref[...], zs,
                         preferred_element_type=jnp.float32)     # (n_way, 128)

        # Direct squared Euclidean distance; padded lanes are exactly zero on
        # both sides so they contribute nothing.
        diff = zq[:, None, :] - protos[None, :, :]               # (Nq, n_way, 128)
        out_ref[...] = -jnp.sum(diff * diff, axis=-1)            # (Nq, n_way)


def _pick_imgs_per_block(nall, hw, ckk, itemsize=2, target_bytes=2 << 20):
    """Largest divisor of nall whose patch block fits the per-step DMA budget;
    keep >=2 pipeline steps so the patches DMA overlaps the conv matmul."""
    divisors = [d for d in range(1, nall + 1) if nall % d == 0]
    fitting = [d for d in divisors if d * hw * ckk * itemsize <= target_bytes]
    d = max(fitting) if fitting else 1
    if d == nall and nall > 1:
        d = max(x for x in divisors if x < nall)
    return d


def fused_protonet_forward(patches, conv_w, conv_b, lin_w, lin_b, avg, *,
                           n_support, n_query, n_way, hw, imgs_per_block):
    total_rows, ckk = patches.shape
    nall = total_rows // hw
    grid = (nall // imgs_per_block,)
    block_rows = imgs_per_block * hw
    kernel = functools.partial(fused_protonet_kernel, n_support=n_support,
                               hw=hw, imgs_per_block=imgs_per_block)
    return pl.pallas_call(
        kernel,
        out_shape=jax.ShapeDtypeStruct((n_query, n_way), jnp.float32),
        grid_spec=pltpu.PrefetchScalarGridSpec(
            num_scalar_prefetch=0,
            grid=grid,
            in_specs=[
                pl.BlockSpec((block_rows, ckk), lambda r: (r, 0)),   # patches
                pl.BlockSpec(conv_w.shape, lambda r: (0, 0)),        # resident
                pl.BlockSpec(conv_b.shape, lambda r: (0, 0)),
                pl.BlockSpec(lin_w.shape, lambda r: (0, 0)),
                pl.BlockSpec(lin_b.shape, lambda r: (0, 0)),
                pl.BlockSpec(avg.shape, lambda r: (0, 0)),
            ],
            out_specs=pl.BlockSpec((n_query, n_way), lambda r: (0, 0)),
            scratch_shapes=[pltpu.VMEM((nall, LANE), jnp.float32)],
        ),
        compiler_params=pltpu.CompilerParams(
            # The image-block axis writes a shared z1 scratch and finalizes on
            # the last step -> it must stay "arbitrary" (sequential).
            dimension_semantics=("arbitrary",),
            # 48 MiB: safely under v7x's 64 MiB physical VMEM, plenty on v5e/v6e.
            vmem_limit_bytes=48 * 1024 * 1024,
        ),
    )(patches, conv_w, conv_b, lin_w, lin_b, avg)


# ----------------------------------------------------------------------------
# Glue (im2col, parameter padding, jitted forward, model wrapper)
# ----------------------------------------------------------------------------

def im2col_3x3(x_nhwc):
    """3x3 same-padding im2col. Returns (N, H*W, C*9)."""
    N, H, W, C = x_nhwc.shape
    xp = jnp.pad(x_nhwc, ((0, 0), (1, 1), (1, 1), (0, 0)))
    cols = []
    for dy in range(3):
        for dx in range(3):
            cols.append(xp[:, dy:dy + H, dx:dx + W, :])
    return jnp.concatenate(cols, axis=-1).reshape(N, H * W, C * 9)


def init_params(key, in_ch=4, f1=32, d2=64):
    k1, k2, k3, k4 = jax.random.split(key, 4)
    return {
        "conv_w": 0.1 * jax.random.normal(k1, (in_ch * 9, f1), jnp.float32),
        "conv_b": 0.1 * jax.random.normal(k2, (1, f1), jnp.float32),
        "lin_w": 0.1 * jax.random.normal(k3, (f1, d2), jnp.float32),
        "lin_b": 0.1 * jax.random.normal(k4, (1, d2), jnp.float32),
    }


@jax.jit
def _protonet_forward(support_images, query_images,
                      conv_w, conv_b, lin_w, lin_b, avg):
    """XLA-side prep (layout, im2col, bf16 cast) fused under one jit + the kernel."""
    ns = support_images.shape[0]
    nq = query_images.shape[0]
    n_way = avg.shape[0]

    images = jnp.concatenate([support_images, query_images], axis=0)
    x = jnp.transpose(images, (0, 2, 3, 1)).astype(jnp.float32)   # NCHW -> NHWC
    patches = im2col_3x3(x)                                        # (Nall, HW, CKK)
    nall, hw, ckk = patches.shape
    # No lane pad to 128: the K=36 contraction is handled by Mosaic; bf16 halves DMA.
    patches = patches.reshape(nall * hw, ckk).astype(jnp.bfloat16)

    ipb = _pick_imgs_per_block(nall, hw, ckk)
    return fused_protonet_forward(
        patches, conv_w, conv_b, lin_w, lin_b, avg,
        n_support=ns, n_query=nq, n_way=n_way, hw=hw, imgs_per_block=ipb)


class PrototypicalNetworks:
    def __init__(self, params, head="ProtoNet"):
        self.params = params
        self.head = head

        ckk, f1 = params["conv_w"].shape
        _, d2 = params["lin_w"].shape
        assert f1 + d2 <= LANE, "features must fit one 128-lane slab"
        self.ckk, self.f1, self.d2 = ckk, f1, d2

        # Pad the *output* lanes of the weights once into a single 128-lane
        # feature slab.  Zero padding keeps padded lanes exactly zero through
        # ReLU / GAP / the distance computation.  The linear weight is shifted
        # into lanes [f1:f1+d2] so torch.cat([z1, z2], -1) becomes an add of
        # disjoint lanes.  Matmul operands are bf16 (f32 accumulation on the
        # MXU); biases stay f32 since they are added post-matmul on the VPU.
        conv_w_p = np.zeros((ckk, LANE), np.float32)
        conv_w_p[:, :f1] = np.asarray(params["conv_w"])
        conv_b_p = np.zeros((1, LANE), np.float32)
        conv_b_p[0, :f1] = np.asarray(params["conv_b"]).reshape(-1)
        lin_w_p = np.zeros((LANE, LANE), np.float32)
        lin_w_p[:f1, f1:f1 + d2] = np.asarray(params["lin_w"])
        lin_b_p = np.zeros((1, LANE), np.float32)
        lin_b_p[0, f1:f1 + d2] = np.asarray(params["lin_b"]).reshape(-1)

        self.conv_w_p = jnp.asarray(conv_w_p, jnp.bfloat16)
        self.conv_b_p = jnp.asarray(conv_b_p, jnp.float32)
        self.lin_w_p = jnp.asarray(lin_w_p, jnp.bfloat16)
        self.lin_b_p = jnp.asarray(lin_b_p, jnp.float32)

        self._avg_cache = {}

    def _class_average_matrix(self, labels, n_way, n_support):
        """Cached per-class averaging matrix (prototype mean as a matmul)."""
        key_ = (labels.tobytes(), int(n_way), int(n_support))
        if key_ not in self._avg_cache:
            avg = np.zeros((n_way, n_support), np.float32)
            for w, c in enumerate(np.unique(labels)):   # torch.unique is sorted
                mask = labels == c
                avg[w, mask] = 1.0 / mask.sum()
            self._avg_cache[key_] = jnp.asarray(avg)
        return self._avg_cache[key_]

    def __call__(self, support_images, support_labels, query_images):
        labels = np.asarray(support_labels)
        n_way = len(np.unique(labels))
        n_shot = int(np.sum(labels == labels[0]))     # matches reference
        del n_shot  # per-class counts are folded into the averaging matrix

        if self.head == "SubspaceNet":
            # TODO(synk): SubspaceNetHead reference not provided; not implemented.
            raise NotImplementedError("SubspaceNet head not implemented")
        if self.head != "ProtoNet":
            print("head not recognized")
            return None

        avg = self._class_average_matrix(labels, n_way, int(support_images.shape[0]))
        return _protonet_forward(support_images, query_images,
                                 self.conv_w_p, self.conv_b_p,
                                 self.lin_w_p, self.lin_b_p, avg)


# ----------------------------------------------------------------------------
# Pure-JAX reference (same bf16 input rounding, f32 accumulation)
# ----------------------------------------------------------------------------

def _reference_scores(params, support_images, support_labels, query_images):
    HIGH = jax.lax.Precision.HIGHEST
    rd = lambda a: jnp.asarray(a, jnp.float32).astype(jnp.bfloat16).astype(jnp.float32)
    conv_w = rd(params["conv_w"])
    lin_w = rd(params["lin_w"])

    def feats(imgs):
        x = jnp.transpose(imgs, (0, 2, 3, 1)).astype(jnp.float32)
        p = rd(im2col_3x3(x))
        y = jnp.maximum(jnp.einsum("nhc,cf->nhf", p, conv_w, precision=HIGH)
                        + params["conv_b"][None], 0.0)
        z1 = jnp.mean(y, axis=1)
        z2 = jnp.einsum("nf,fd->nd", rd(z1), lin_w, precision=HIGH) + params["lin_b"]
        return jnp.concatenate([z1, z2], axis=-1)

    zs, zq = feats(support_images), feats(query_images)
    labels = np.asarray(support_labels)
    classes = np.unique(labels)
    protos = jnp.stack([zs[labels == c].mean(axis=0) for c in classes])
    d2 = jnp.sum((zq[:, None, :] - protos[None, :, :]) ** 2, axis=-1)
    return -d2


# ----------------------------------------------------------------------------
# Main
# ----------------------------------------------------------------------------

if __name__ == "__main__":
    key = jax.random.PRNGKey(0)
    k_par, k_sup, k_qry = jax.random.split(key, 3)

    n_way, n_shot, n_query_per_class = 4, 2, 2
    C, H, W = 4, 16, 16
    Ns = n_way * n_shot
    Nq = n_way * n_query_per_class

    params = init_params(k_par, in_ch=C, f1=32, d2=64)

    support_images = jax.random.normal(k_sup, (Ns, C, H, W), jnp.float32)
    query_images = jax.random.normal(k_qry, (Nq, C, H, W), jnp.float32)
    support_labels = np.repeat(np.arange(n_way, dtype=np.int32), n_shot)

    model = PrototypicalNetworks(params, head="ProtoNet")
    scores = model(support_images, support_labels, query_images)
    scores = jax.block_until_ready(scores)

    ref = _reference_scores(params, support_images, support_labels, query_images)
    # bf16 matmul operands (f32 accumulation) -> relaxed from 1e-4 to 1e-2.
    np.testing.assert_allclose(np.asarray(scores), np.asarray(ref),
                               rtol=1e-2, atol=1e-2)

    assert scores.shape == (Nq, n_way)
    print("KERNEL_OK")
</pallas_src>

<mosaic_0001>
module attributes {stable_mosaic.version = 11 : i64} {
  func.func @fused_protonet_kernel(%arg0: i32, %arg1: memref<2048x36xbf16, #tpu.memory_space<vmem>>, %arg2: memref<36x128xbf16, #tpu.memory_space<vmem>>, %arg3: memref<1x128xf32, #tpu.memory_space<vmem>>, %arg4: memref<128x128xbf16, #tpu.memory_space<vmem>>, %arg5: memref<1x128xf32, #tpu.memory_space<vmem>>, %arg6: memref<4x8xf32, #tpu.memory_space<vmem>>, %arg7: memref<8x4xf32, #tpu.memory_space<vmem>>, %arg8: memref<16x128xf32, #tpu.memory_space<vmem>>) attributes {dimension_semantics = [#tpu.dimension_semantics<arbitrary>], iteration_bounds = array<i64: 2>, scalar_prefetch = 0 : i64, scratch_operands = 1 : i64, tpu.core_type = #tpu.core_type<tc>, window_params = [{transform_indices = @transform_0, window_bounds = array<i64: 2048, 36>}, {pipeline_mode = #tpu.pipeline_mode<synchronous>, transform_indices = @transform_1, window_bounds = array<i64: 36, 128>}, {pipeline_mode = #tpu.pipeline_mode<synchronous>, transform_indices = @transform_2, window_bounds = array<i64: 1, 128>}, {pipeline_mode = #tpu.pipeline_mode<synchronous>, transform_indices = @transform_3, window_bounds = array<i64: 128, 128>}, {pipeline_mode = #tpu.pipeline_mode<synchronous>, transform_indices = @transform_4, window_bounds = array<i64: 1, 128>}, {pipeline_mode = #tpu.pipeline_mode<synchronous>, transform_indices = @transform_5, window_bounds = array<i64: 4, 8>}, {pipeline_mode = #tpu.pipeline_mode<synchronous>, transform_indices = @transform_6, window_bounds = array<i64: 8, 4>}]} {
    %c0 = arith.constant 0 : index
    %c0_0 = arith.constant 0 : index
    %0 = vector.load %arg1[%c0, %c0_0] : memref<2048x36xbf16, #tpu.memory_space<vmem>>, vector<2048x36xbf16>
    %c0_1 = arith.constant 0 : index
    %c0_2 = arith.constant 0 : index
    %1 = vector.load %arg2[%c0_1, %c0_2] : memref<36x128xbf16, #tpu.memory_space<vmem>>, vector<36x128xbf16>
    %cst = arith.constant dense<0.000000e+00> : vector<2048x128xf32>
    %2 = tpu.matmul %0, %1, %cst {dimension_numbers = #tpu.dot_dimension_numbers<[1], [0], [0], [1], [0, 0, 1, 1], [], []>} : vector<2048x36xbf16>, vector<36x128xbf16>, vector<2048x128xf32> -> vector<2048x128xf32>
    %c0_3 = arith.constant 0 : index
    %c0_4 = arith.constant 0 : index
    %3 = vector.load %arg3[%c0_3, %c0_4] : memref<1x128xf32, #tpu.memory_space<vmem>>, vector<1x128xf32>
    %4 = vector.broadcast %3 : vector<1x128xf32> to vector<2048x128xf32>
    %5 = arith.addf %2, %4 : vector<2048x128xf32>
    %cst_5 = arith.constant 0.000000e+00 : f32
    %6 = vector.broadcast %cst_5 : f32 to vector<2048x128xf32>
    %7 = arith.maximumf %5, %6 : vector<2048x128xf32>
    %8 = vector.shape_cast %7 : vector<2048x128xf32> to vector<8x256x128xf32>
    %cst_6 = arith.constant dense<0.000000e+00> : vector<8x128xf32>
    %9 = vector.multi_reduction <add>, %8, %cst_6 [1] : vector<8x256x128xf32> to vector<8x128xf32>
    %cst_7 = arith.constant 2.560000e+02 : f32
    %10 = vector.broadcast %cst_7 : f32 to vector<8x128xf32>
    %11 = arith.divf %9, %10 : vector<8x128xf32>
    %c8_i32 = arith.constant 8 : i32
    %12 = arith.muli %arg0, %c8_i32 : i32
    %13 = tpu.assume_multiple %12, 8 : i32
    %14 = arith.index_cast %13 : i32 to index
    %c0_8 = arith.constant 0 : index
    %15 = vector.load %arg8[%14, %c0_8] : memref<16x128xf32, #tpu.memory_space<vmem>>, vector<8x128xf32>
    tpu.vector_store %arg8[%14, %c0_8], %11 {strides = array<i32>} : memref<16x128xf32, #tpu.memory_space<vmem>>, vector<8x128xf32>,
    %c1_i32 = arith.constant 1 : i32
    %16 = arith.cmpi eq, %arg0, %c1_i32 : i32
    %17 = arith.extui %16 : i1 to i32
    %c0_i32 = arith.constant 0 : i32
    %18 = arith.cmpi ne, %17, %c0_i32 : i32
    scf.if %18 {
      %c0_9 = arith.constant 0 : index
      %c0_10 = arith.constant 0 : index
      %19 = vector.load %arg8[%c0_9, %c0_10] : memref<16x128xf32, #tpu.memory_space<vmem>>, vector<16x128xf32>
      %20 = arith.truncf %19 : vector<16x128xf32> to vector<16x128xbf16>
      %c0_11 = arith.constant 0 : index
      %c0_12 = arith.constant 0 : index
      %21 = vector.load %arg4[%c0_11, %c0_12] : memref<128x128xbf16, #tpu.memory_space<vmem>>, vector<128x128xbf16>
      %cst_13 = arith.constant dense<0.000000e+00> : vector<16x128xf32>
      %22 = tpu.matmul %20, %21, %cst_13 {dimension_numbers = #tpu.dot_dimension_numbers<[1], [0], [0], [1], [0, 0, 1, 1], [], []>} : vector<16x128xbf16>, vector<128x128xbf16>, vector<16x128xf32> -> vector<16x128xf32>
      %c0_14 = arith.constant 0 : index
      %c0_15 = arith.constant 0 : index
      %23 = vector.load %arg5[%c0_14, %c0_15] : memref<1x128xf32, #tpu.memory_space<vmem>>, vector<1x128xf32>
      %24 = vector.broadcast %23 : vector<1x128xf32> to vector<16x128xf32>
      %25 = arith.addf %22, %24 : vector<16x128xf32>
      %26 = arith.addf %19, %25 : vector<16x128xf32>
      %27 = vector.extract_strided_slice %26 {offsets = [0, 0], sizes = [8, 128], strides = [1, 1]} : vector<16x128xf32> to vector<8x128xf32>
      %28 = vector.extract_strided_slice %26 {offsets = [8, 0], sizes = [8, 128], strides = [1, 1]} : vector<16x128xf32> to vector<8x128xf32>
      %c0_16 = arith.constant 0 : index
      %c0_17 = arith.constant 0 : index
      %29 = vector.load %arg6[%c0_16, %c0_17] : memref<4x8xf32, #tpu.memory_space<vmem>>, vector<4x8xf32>
      %cst_18 = arith.constant dense<0.000000e+00> : vector<4x128xf32>
      %30 = tpu.matmul %29, %27, %cst_18 {dimension_numbers = #tpu.dot_dimension_numbers<[1], [0], [0], [1], [0, 0, 1, 1], [], []>} : vector<4x8xf32>, vector<8x128xf32>, vector<4x128xf32> -> vector<4x128xf32>
      %31 = vector.shape_cast %28 : vector<8x128xf32> to vector<8x1x128xf32>
      %32 = vector.shape_cast %30 : vector<4x128xf32> to vector<1x4x128xf32>
      %33 = vector.broadcast %31 : vector<8x1x128xf32> to vector<8x4x128xf32>
      %34 = vector.broadcast %32 : vector<1x4x128xf32> to vector<8x4x128xf32>
      %35 = arith.subf %33, %34 : vector<8x4x128xf32>
      %36 = arith.mulf %35, %35 : vector<8x4x128xf32>
      %cst_19 = arith.constant dense<0.000000e+00> : vector<8x4xf32>
      %37 = vector.multi_reduction <add>, %36, %cst_19 [2] : vector<8x4x128xf32> to vector<8x4xf32>
      %cst_20 = arith.constant 0.000000e+00 : f32
      %38 = vector.broadcast %cst_20 : f32 to vector<8x4xf32>
      %39 = arith.subf %38, %37 : vector<8x4xf32>
      %c0_21 = arith.constant 0 : index
      %c0_22 = arith.constant 0 : index
      %40 = vector.load %arg7[%c0_21, %c0_22] : memref<8x4xf32, #tpu.memory_space<vmem>>, vector<8x4xf32>
      tpu.vector_store %arg7[%c0_21, %c0_22], %39 {strides = array<i32>} : memref<8x4xf32, #tpu.memory_space<vmem>>, vector<8x4xf32>,
    } else {
    }
    return
  }
  func.func @transform_0(%arg0: i32) -> (i32, i32) {
    %c0_i32 = arith.constant 0 : i32
    %c0_i32_0 = arith.constant 0 : i32
    return %arg0, %c0_i32 : i32, i32
  }
  func.func @transform_1(%arg0: i32) -> (i32, i32) {
    %c0_i32 = arith.constant 0 : i32
    %c0_i32_0 = arith.constant 0 : i32
    %c0_i32_1 = arith.constant 0 : i32
    return %c0_i32, %c0_i32_0 : i32, i32
  }
  func.func @transform_2(%arg0: i32) -> (i32, i32) {
    %c0_i32 = arith.constant 0 : i32
    %c0_i32_0 = arith.constant 0 : i32
    %c0_i32_1 = arith.constant 0 : i32
    return %c0_i32, %c0_i32_0 : i32, i32
  }
  func.func @transform_3(%arg0: i32) -> (i32, i32) {
    %c0_i32 = arith.constant 0 : i32
    %c0_i32_0 = arith.constant 0 : i32
    %c0_i32_1 = arith.constant 0 : i32
    return %c0_i32, %c0_i32_0 : i32, i32
  }
  func.func @transform_4(%arg0: i32) -> (i32, i32) {
    %c0_i32 = arith.constant 0 : i32
    %c0_i32_0 = arith.constant 0 : i32
    %c0_i32_1 = arith.constant 0 : i32
    return %c0_i32, %c0_i32_0 : i32, i32
  }
  func.func @transform_5(%arg0: i32) -> (i32, i32) {
    %c0_i32 = arith.constant 0 : i32
    %c0_i32_0 = arith.constant 0 : i32
    %c0_i32_1 = arith.constant 0 : i32
    return %c0_i32, %c0_i32_0 : i32, i32
  }
  func.func @transform_6(%arg0: i32) -> (i32, i32) {
    %c0_i32 = arith.constant 0 : i32
    %c0_i32_0 = arith.constant 0 : i32
    %c0_i32_1 = arith.constant 0 : i32
    return %c0_i32, %c0_i32_0 : i32, i32
  }
}

</mosaic_0001>

<bundles_post_ra>
// kernel: _protonet_forward.1
= control target key start
LH: loop header
LB: loop body
LE: loop exit
PB: predicated region body
PF: predicated region fallthrough
CT: control target
= control target key end

     0   :  { %s4528_s21 = smov 0   ;;  %s5157_s0 = inlined_call_operand.vmem [shape: bf16[4096,36], index: 0, kind: input, shape index: {}]   ;;  %s5158_s1 = inlined_call_operand.vmem [shape: bf16[36,128], index: 1, kind: input, shape index: {}]   ;;  %s5159_s2 = inlined_call_operand.vmem [shape: f32[1,128], index: 2, kind: input, shape index: {}]   ;;  %s5160_s3 = inlined_call_operand.vmem [shape: bf16[128,128], index: 3, kind: input, shape index: {}]   ;;  %s5161_s4 = inlined_call_operand.vmem [shape: f32[1,128], index: 4, kind: input, shape index: {}]   ;;  %s5162_s5 = inlined_call_operand.vmem [shape: f32[4,8], index: 5, kind: input, shape index: {}]   ;;  %s5163_s6 = inlined_call_operand.vmem [shape: f32[8,4], index: 6, kind: output, shape index: {}]  }
   0x1 LB: > { %s4534_s22 = sadd.s32 4294967295, %s4488_s21   ;;  %p3616_p0 = scmp.ge.s32.totalorder %s4488_s21, 1  ;;  %s4488_s21 = sphi %s4528_s21, %s16_s21  }
   0x2   : > { %p208_p1 = scmp.lt.s32.totalorder %s4488_s21, 3 }
   0x4   : > { %p209_p2 = pnand %p3616_p0, %p208_p1 }
   0x5   : > { %v4341_v0 = vld [vmem:[%s5158_s1] sm:$0xff] (!%p209_p2)   ;;  %v4342_v1 = vld [vmem:[%s5158_s1 + $0x8] sm:$0xff] (!%p209_p2)   ;;  %s3617_s27 = sshll.u32 (!%p209_p2), %s4534_s22, 8  ;;  %v4343_v2 = vld [vmem:[%s5158_s1 + $0x10] ss:$0 sps:$4 sm:$0x33] (!%p209_p2)  }
   0x6   : > { %212 = sbr.rel (%p209_p2) target bundleno = 1132 (0x46c), region = 44  ;;  %4035 = vmatprep.subr.bf16.mxu0 (!%p209_p2), %v4341_v0  ;;  %4322 = vmatprep.subr.bf16.mxu1 (!%p209_p2), %v4341_v0  ;;  %p234_p3 = scmp.lt.s32.totalorder (!%p209_p2), %s3617_s27, 511  ;;  %vm1548_vm0 = vcmask (!%p209_p2), 1041408   ;;  %vm1163_vm1 = vcmask (!%p209_p2), 293888   ;;  %vm3179_vm2 = vcmask (!%p209_p2), 1041409   ;;  %vm3181_vm3 = vcmask (!%p209_p2), 1042434  }
   0x7   : > { %4036 = vmatpush3.bf16.msra.mxu0 (!%p209_p2), %v4341_v0  ;;  %4325 = vmatpush3.bf16.msra.mxu1 (!%p209_p2), %v4341_v0  ;;  %v1550_v3 = vsel (!%p209_p2), %vm1548_vm0, %v4343_v2, 0  ;;  %vm3183_vm4 = vcmask (!%p209_p2), 1043459   ;;  %vm3185_vm5 = vcmask (!%p209_p2), 1044484   ;;  %s3879_s16 = sshll.u32 (!%p209_p2), %s4534_s22, 3  ;;  %vm3187_vm6 = vcmask (!%p209_p2), 1045509   ;;  %p3880_p4 = scmp.ne.s32.totalorder (!%p209_p2), %s4534_s22, 1 }
   0x8   : > { %4037 = vmatprep.subr.bf16.mxu0 (!%p209_p2), %v4342_v1  ;;  %4323 = vmatprep.subr.bf16.mxu1 (!%p209_p2), %v4342_v1  ;;  %vm3189_vm7 = vcmask (!%p209_p2), 1046534   ;;  %vm3191_vm8 = vcmask (!%p209_p2), 1047559   ;;  %s3194_s17 = scalar_lea.vmem (!%p209_p2), [#allocation2], %s3879_s16 }
   0xb   : > { %4038 = vmatpush3.bf16.msra.mxu0 (!%p209_p2), %v4342_v1  ;;  %4326 = vmatpush3.bf16.msra.mxu1 (!%p209_p2), %v4342_v1 }
   0xc   : > { %4328 = vmatprep.subr.msk.bf16.mxu0 (!%p209_p2), %vm1548_vm0, %v4343_v2  ;;  %4329 = vmatprep.subr.msk.bf16.mxu1 (!%p209_p2), %vm1548_vm0, %v4343_v2 }
   0xd   : > { %s5165_s27 = smov (!%p234_p3, %s3617_s27), 511  ;;  %vm4491_vm9 = vmmov (!%p3880_p4), 0   ;;  %vm3318_vm10 = vcmask (!%p3880_p4), 64512   ;;  %vm3498_vm11 = vcmask (!%p3880_p4), 1043456   ;;  %vm3581_vm12 = vcmask (!%p3880_p4), 31744  }
   0xe   : > { %s3618_s30 = sshll.u32 %s5165_s27, 2 }
   0xf   : > { %s4551_s9 = scalar_lea.vmem %s5157_s0, %s3618_s30  ;;  %4040 = vmatpush3.bf16.msra.mxu0 %v1550_v3  ;;  %4327 = vmatpush3.bf16.msra.mxu1 %v1550_v3 }
  0x10   : > { %v4344_v4 = vld [vmem:[%s4551_s9] sm:$0xff]   ;;  %v4346_v6 = vld [vmem:[%s4551_s9 + $0x8] sm:$0xff]   ;;  %v4348_v8 = vld [vmem:[%s4551_s9 + $0x10] sm:$0xff]  }
  0x11   : > { %v4345_v5 = vld [vmem:[%s4551_s9 + $0x200] sm:$0xff]   ;;  %4041 = vmatprep.mubr.msk.bf16.mxu0 %vm1163_vm1, %v4344_v4  ;;  %v4347_v7 = vld [vmem:[%s4551_s9 + $0x208] sm:$0xff]   ;;  %v4349_v9 = vld [vmem:[%s4551_s9 + $0x210] sm:$0xff]  }
  0x12   : > { %4169 = vmatprep.mubr.msk.bf16.mxu1 %vm1163_vm1, %v4345_v5  ;;  %4042 = vmatmul.mubr.msk.bf16.vlgmr.msra.gmra.mrb[0].mxu0 %vm1163_vm1, %v4346_v6  ;;  %v4350_v10 = vld [vmem:[%s4551_s9 + $0x18] sm:$0xff]   ;;  %v4352_v12 = vld [vmem:[%s4551_s9 + $0x20] sm:$0xff]   ;;  %v4354_v14 = vld [vmem:[%s4551_s9 + $0x28] sm:$0xff]  }
  0x13   : > { %4170 = vmatmul.mubr.msk.bf16.vlgmr.msra.gmra.mrb[0].mxu1 %vm1163_vm1, %v4347_v7  ;;  %4045 = vmatprep.mubr.msk.bf16.mxu0 %vm1163_vm1, %v4348_v8  ;;  %v4351_v11 = vld [vmem:[%s4551_s9 + $0x218] sm:$0xff]   ;;  %v4353_v13 = vld [vmem:[%s4551_s9 + $0x220] sm:$0xff]   ;;  %v4355_v15 = vld [vmem:[%s4551_s9 + $0x228] sm:$0xff]  }
  0x14   : > { %4173 = vmatprep.mubr.msk.bf16.mxu1 %vm1163_vm1, %v4349_v9  ;;  %v4356_v16 = vld [vmem:[%s4551_s9 + $0x30] sm:$0xff]   ;;  %v4358_v18 = vld [vmem:[%s4551_s9 + $0x38] sm:$0xff]   ;;  %v4360_v20 = vld [vmem:[%s4551_s9 + $0x40] sm:$0xff]  }
  0x15   : > { %v4357_v17 = vld [vmem:[%s4551_s9 + $0x230] sm:$0xff]   ;;  %v4359_v19 = vld [vmem:[%s4551_s9 + $0x238] sm:$0xff]   ;;  %v4361_v21 = vld [vmem:[%s4551_s9 + $0x240] sm:$0xff]  }
  0x16   : > { %v4362_v22 = vld [vmem:[%s4551_s9 + $0x48] sm:$0xff]   ;;  %v4364_v24 = vld [vmem:[%s4551_s9 + $0x50] sm:$0xff]   ;;  %v4366_v26 = vld [vmem:[%s4551_s9 + $0x58] sm:$0xff]  }
  0x17   : > { %v4363_v23 = vld [vmem:[%s4551_s9 + $0x248] sm:$0xff]   ;;  %v4365_v25 = vld [vmem:[%s4551_s9 + $0x250] sm:$0xff]   ;;  %v4367_v27 = vld [vmem:[%s4551_s9 + $0x258] sm:$0xff]  }
  0x18   : > { %v4368_v28 = vld [vmem:[%s4551_s9 + $0x60] sm:$0xff]   ;;  %v4370_v30 = vld [vmem:[%s4551_s9 + $0x68] sm:$0xff]   ;;  %v4372_v32 = vld [vmem:[%s4551_s9 + $0x70] sm:$0xff]  }
  0x19   : > { %v4369_v29 = vld [vmem:[%s4551_s9 + $0x260] sm:$0xff]   ;;  %v4371_v31 = vld [vmem:[%s4551_s9 + $0x268] sm:$0xff]   ;;  %v4373_v33 = vld [vmem:[%s4551_s9 + $0x270] sm:$0xff]  }
  0x1a   : > { %4046 = vmatmul.mubr.msk.bf16.gmra.mrb[4].mxu0 %vm1163_vm1, %v4350_v10  ;;  %v4374_v34 = vld [vmem:[%s4551_s9 + $0x78] sm:$0xff]   ;;  %v4376_v36 = vld [vmem:[%s4551_s9 + $0x80] sm:$0xff]   ;;  %v4378_v38 = vld [vmem:[%s4551_s9 + $0x88] sm:$0xff]  }
  0x1b   : > { %4174 = vmatmul.mubr.msk.bf16.gmra.mrb[4].mxu1 %vm1163_vm1, %v4351_v11  ;;  %4049 = vmatprep.mubr.msk.bf16.mxu0 %vm1163_vm1, %v4352_v12  ;;  %v4375_v35 = vld [vmem:[%s4551_s9 + $0x278] sm:$0xff]   ;;  %v4377_v37 = vld [vmem:[%s4551_s9 + $0x280] sm:$0xff]   ;;  %v4379_v39 = vld [vmem:[%s4551_s9 + $0x288] sm:$0xff]  }
  0x1c   : > { %4177 = vmatprep.mubr.msk.bf16.mxu1 %vm1163_vm1, %v4353_v13  ;;  %v4380_v40 = vld [vmem:[%s4551_s9 + $0x90] sm:$0xff]   ;;  %v4382_v42 = vld [vmem:[%s4551_s9 + $0x98] sm:$0xff]   ;;  %v4384_v44 = vld [vmem:[%s4551_s9 + $0xa0] sm:$0xff]  }
  0x1d   : > { %v4381_v41 = vld [vmem:[%s4551_s9 + $0x290] sm:$0xff]   ;;  %v4383_v43 = vld [vmem:[%s4551_s9 + $0x298] sm:$0xff]   ;;  %v4385_v45 = vld [vmem:[%s4551_s9 + $0x2a0] sm:$0xff]  }
  0x1e   : > { %v4386_v46 = vld [vmem:[%s4551_s9 + $0xa8] sm:$0xff]   ;;  %v4388_v48 = vld [vmem:[%s4551_s9 + $0xb0] sm:$0xff]   ;;  %v4390_v50 = vld [vmem:[%s4551_s9 + $0xb8] sm:$0xff]  }
  0x1f   : > { %v4387_v47 = vld [vmem:[%s4551_s9 + $0x2a8] sm:$0xff]   ;;  %v4389_v49 = vld [vmem:[%s4551_s9 + $0x2b0] sm:$0xff]   ;;  %v4391_v51 = vld [vmem:[%s4551_s9 + $0x2b8] sm:$0xff]  }
  0x20   : > { %v4392_v52 = vld [vmem:[%s4551_s9 + $0xc0] sm:$0xff]   ;;  %v4394_v54 = vld [vmem:[%s4551_s9 + $0xc8] sm:$0xff]   ;;  %v4396_v56 = vld [vmem:[%s4551_s9 + $0xd0] sm:$0xff]  }
  0x21   : > { %v4393_v53 = vld [vmem:[%s4551_s9 + $0x2c0] sm:$0xff]   ;;  %v4395_v55 = vld [vmem:[%s4551_s9 + $0x2c8] sm:$0xff]   ;;  %v4397_v57 = vld [vmem:[%s4551_s9 + $0x2d0] sm:$0xff]  }
  0x22   : > { %4050 = vmatmul.mubr.msk.bf16.gmra.mrb[8].mxu0 %vm1163_vm1, %v4354_v14  ;;  %v4398_v58 = vld [vmem:[%s4551_s9 + $0xd8] sm:$0xff]   ;;  %v4400_v60 = vld [vmem:[%s4551_s9 + $0xe0] sm:$0xff]   ;;  %v4402_v62 = vld [vmem:[%s4551_s9 + $0xe8] sm:$0xff]  }
  0x23   : > { %4178 = vmatmul.mubr.msk.bf16.gmra.mrb[8].mxu1 %vm1163_vm1, %v4355_v15  ;;  %4053 = vmatprep.mubr.msk.bf16.mxu0 %vm1163_vm1, %v4356_v16  ;;  %v4399_v59 = vld [vmem:[%s4551_s9 + $0x2d8] sm:$0xff]   ;;  %v4401_v61 = vld [vmem:[%s4551_s9 + $0x2e0] sm:$0xff]   ;;  %v4403_v63 = vld [vmem:[%s4551_s9 + $0x2e8] sm:$0xff]  }
  0x24   : > { %4181 = vmatprep.mubr.msk.bf16.mxu1 %vm1163_vm1, %v4357_v17  ;;  %v4404_v0 = vld [vmem:[%s4551_s9 + $0xf0] sm:$0xff]   ;;  %v4406_v2 = vld [vmem:[%s4551_s9 + $0xf8] sm:$0xff]   ;;  %v4408_v4 = vld [vmem:[%s4551_s9 + $0x100] sm:$0xff]  }
  0x25   : > { %v4405_v1 = vld [vmem:[%s4551_s9 + $0x2f0] sm:$0xff]   ;;  %v4407_v3 = vld [vmem:[%s4551_s9 + $0x2f8] sm:$0xff]   ;;  %v4409_v5 = vld [vmem:[%s4551_s9 + $0x300] sm:$0xff]  }
  0x26   : > { %v4410_v6 = vld [vmem:[%s4551_s9 + $0x108] sm:$0xff]   ;;  %v4412_v8 = vld [vmem:[%s4551_s9 + $0x110] sm:$0xff]   ;;  %v4414_v10 = vld [vmem:[%s4551_s9 + $0x118] sm:$0xff]  }
  0x27   : > { %v4411_v7 = vld [vmem:[%s4551_s9 + $0x308] sm:$0xff]   ;;  %v4413_v9 = vld [vmem:[%s4551_s9 + $0x310] sm:$0xff]   ;;  %v4415_v11 = vld [vmem:[%s4551_s9 + $0x318] sm:$0xff]  }
  0x28   : > { %v4416_v12 = vld [vmem:[%s4551_s9 + $0x120] sm:$0xff]   ;;  %v4418_v14 = vld [vmem:[%s4551_s9 + $0x128] sm:$0xff]   ;;  %v4420_v16 = vld [vmem:[%s4551_s9 + $0x130] sm:$0xff]  }
  0x29   : > { %v4417_v13 = vld [vmem:[%s4551_s9 + $0x320] sm:$0xff]   ;;  %v4419_v15 = vld [vmem:[%s4551_s9 + $0x328] sm:$0xff]   ;;  %v4421_v17 = vld [vmem:[%s4551_s9 + $0x330] sm:$0xff]  }
  0x2a   : > { %4054 = vmatmul.mubr.msk.bf16.gmra.mrb[12].mxu0 %vm1163_vm1, %v4358_v18  ;;  %v4422_v18 = vld [vmem:[%s4551_s9 + $0x138] sm:$0xff]  }
  0x2b   : > { %4182 = vmatmul.mubr.msk.bf16.gmra.mrb[12].mxu1 %vm1163_vm1, %v4359_v19  ;;  %4057 = vmatprep.mubr.msk.bf16.mxu0 %vm1163_vm1, %v4360_v20  ;;  %v4423_v19 = vld [vmem:[%s4551_s9 + $0x338] sm:$0xff]   ;;  %v4424_v20 = vld [vmem:[%s4551_s9 + $0x140] sm:$0xff]  }
  0x2c   : > { %4185 = vmatprep.mubr.msk.bf16.mxu1 %vm1163_vm1, %v4361_v21  ;;  %v4425_v21 = vld [vmem:[%s4551_s9 + $0x340] sm:$0xff]  }
  0x32   : > { %4058 = vmatmul.mubr.msk.bf16.gmra.mrb[16].mxu0 %vm1163_vm1, %v4362_v22  ;;  %v4426_v22 = vld [vmem:[%s4551_s9 + $0x148] sm:$0xff]  }
  0x33   : > { %4186 = vmatmul.mubr.msk.bf16.gmra.mrb[16].mxu1 %vm1163_vm1, %v4363_v23  ;;  %4061 = vmatprep.mubr.msk.bf16.mxu0 %vm1163_vm1, %v4364_v24  ;;  %v4427_v23 = vld [vmem:[%s4551_s9 + $0x348] sm:$0xff]   ;;  %v4428_v24 = vld [vmem:[%s4551_s9 + $0x150] sm:$0xff]  }
  0x34   : > { %4189 = vmatprep.mubr.msk.bf16.mxu1 %vm1163_vm1, %v4365_v25  ;;  %v4429_v25 = vld [vmem:[%s4551_s9 + $0x350] sm:$0xff]  }
  0x3a   : > { %4062 = vmatmul.mubr.msk.bf16.gmra.mrb[20].mxu0 %vm1163_vm1, %v4366_v26  ;;  %v4430_v26 = vld [vmem:[%s4551_s9 + $0x158] sm:$0xff]  }
  0x3b   : > { %4190 = vmatmul.mubr.msk.bf16.gmra.mrb[20].mxu1 %vm1163_vm1, %v4367_v27  ;;  %4065 = vmatprep.mubr.msk.bf16.mxu0 %vm1163_vm1, %v4368_v28  ;;  %v4431_v27 = vld [vmem:[%s4551_s9 + $0x358] sm:$0xff]   ;;  %v4432_v28 = vld [vmem:[%s4551_s9 + $0x160] sm:$0xff]  }
  0x3c   : > { %4193 = vmatprep.mubr.msk.bf16.mxu1 %vm1163_vm1, %v4369_v29  ;;  %v4433_v29 = vld [vmem:[%s4551_s9 + $0x360] sm:$0xff]  }
  0x42   : > { %4066 = vmatmul.mubr.msk.bf16.gmra.mrb[24].mxu0 %vm1163_vm1, %v4370_v30  ;;  %v4434_v30 = vld [vmem:[%s4551_s9 + $0x168] sm:$0xff]  }
  0x43   : > { %4194 = vmatmul.mubr.msk.bf16.gmra.mrb[24].mxu1 %vm1163_vm1, %v4371_v31  ;;  %4069 = vmatprep.mubr.msk.bf16.mxu0 %vm1163_vm1, %v4372_v32  ;;  %v4435_v31 = vld [vmem:[%s4551_s9 + $0x368] sm:$0xff]   ;;  %v4436_v32 = vld [vmem:[%s4551_s9 + $0x170] sm:$0xff]  }
  0x44   : > { %4197 = vmatprep.mubr.msk.bf16.mxu1 %vm1163_vm1, %v4373_v33  ;;  %v4437_v33 = vld [vmem:[%s4551_s9 + $0x370] sm:$0xff]  }
  0x4a   : > { %4070 = vmatmul.mubr.msk.bf16.gmra.mrb[28].mxu0 %vm1163_vm1, %v4374_v34  ;;  %v4438_v34 = vld [vmem:[%s4551_s9 + $0x178] sm:$0xff]  }
  0x4b   : > { %4198 = vmatmul.mubr.msk.bf16.gmra.mrb[28].mxu1 %vm1163_vm1, %v4375_v35  ;;  %4073 = vmatprep.mubr.msk.bf16.mxu0 %vm1163_vm1, %v4376_v36  ;;  %v4439_v35 = vld [vmem:[%s4551_s9 + $0x378] sm:$0xff]   ;;  %v4440_v36 = vld [vmem:[%s4551_s9 + $0x180] sm:$0xff]  }
  0x4c   : > { %4201 = vmatprep.mubr.msk.bf16.mxu1 %vm1163_vm1, %v4377_v37  ;;  %v4441_v37 = vld [vmem:[%s4551_s9 + $0x380] sm:$0xff]  }
  0x52   : > { %4074 = vmatmul.mubr.msk.bf16.gmra.mrb[32].mxu0 %vm1163_vm1, %v4378_v38  ;;  %v4442_v38 = vld [vmem:[%s4551_s9 + $0x188] sm:$0xff]  }
  0x53   : > { %4202 = vmatmul.mubr.msk.bf16.gmra.mrb[32].mxu1 %vm1163_vm1, %v4379_v39  ;;  %4077 = vmatprep.mubr.msk.bf16.mxu0 %vm1163_vm1, %v4380_v40  ;;  %v4443_v39 = vld [vmem:[%s4551_s9 + $0x388] sm:$0xff]   ;;  %v4444_v40 = vld [vmem:[%s4551_s9 + $0x190] sm:$0xff]  }
  0x54   : > { %4205 = vmatprep.mubr.msk.bf16.mxu1 %vm1163_vm1, %v4381_v41  ;;  %v4445_v41 = vld [vmem:[%s4551_s9 + $0x390] sm:$0xff]  }
  0x5a   : > { %4078 = vmatmul.mubr.msk.bf16.gmra.mrb[36].mxu0 %vm1163_vm1, %v4382_v42  ;;  %v4446_v42 = vld [vmem:[%s4551_s9 + $0x198] sm:$0xff]  }
  0x5b   : > { %4206 = vmatmul.mubr.msk.bf16.gmra.mrb[36].mxu1 %vm1163_vm1, %v4383_v43  ;;  %4081 = vmatprep.mubr.msk.bf16.mxu0 %vm1163_vm1, %v4384_v44  ;;  %v4447_v43 = vld [vmem:[%s4551_s9 + $0x398] sm:$0xff]   ;;  %v4448_v44 = vld [vmem:[%s4551_s9 + $0x1a0] sm:$0xff]  }
  0x5c   : > { %4209 = vmatprep.mubr.msk.bf16.mxu1 %vm1163_vm1, %v4385_v45  ;;  %v4449_v45 = vld [vmem:[%s4551_s9 + $0x3a0] sm:$0xff]  }
  0x62   : > { %4082 = vmatmul.mubr.msk.bf16.gmra.mrb[40].mxu0 %vm1163_vm1, %v4386_v46  ;;  %v4450_v46 = vld [vmem:[%s4551_s9 + $0x1a8] sm:$0xff]  }
  0x63   : > { %4210 = vmatmul.mubr.msk.bf16.gmra.mrb[40].mxu1 %vm1163_vm1, %v4387_v47  ;;  %4085 = vmatprep.mubr.msk.bf16.mxu0 %vm1163_vm1, %v4388_v48  ;;  %v4451_v47 = vld [vmem:[%s4551_s9 + $0x3a8] sm:$0xff]   ;;  %v4452_v48 = vld [vmem:[%s4551_s9 + $0x1b0] sm:$0xff]  }
  0x64   : > { %4213 = vmatprep.mubr.msk.bf16.mxu1 %vm1163_vm1, %v4389_v49  ;;  %v4453_v49 = vld [vmem:[%s4551_s9 + $0x3b0] sm:$0xff]  }
  0x6a   : > { %4086 = vmatmul.mubr.msk.bf16.gmra.mrb[44].mxu0 %vm1163_vm1, %v4390_v50  ;;  %v4776_v50 = vld [vmem:[%s5159_s2] ss:$0 sm:$0xff] }
  0x6b   : > { %4214 = vmatmul.mubr.msk.bf16.gmra.mrb[44].mxu1 %vm1163_vm1, %v4391_v51  ;;  %4089 = vmatprep.mubr.msk.bf16.mxu0 %vm1163_vm1, %v4392_v52 }
  0x6c   : > { %4217 = vmatprep.mubr.msk.bf16.mxu1 %vm1163_vm1, %v4393_v53 }
  0x72   : > { %4090 = vmatmul.mubr.msk.bf16.gmra.mrb[48].mxu0 %vm1163_vm1, %v4394_v54 }
  0x73   : > { %4218 = vmatmul.mubr.msk.bf16.gmra.mrb[48].mxu1 %vm1163_vm1, %v4395_v55  ;;  %4093 = vmatprep.mubr.msk.bf16.mxu0 %vm1163_vm1, %v4396_v56  ;;  %v4454_v55 = vld [vmem:[%s4551_s9 + $0x1b8] sm:$0xff]  }
  0x74   : > { %4221 = vmatprep.mubr.msk.bf16.mxu1 %vm1163_vm1, %v4397_v57  ;;  %v4455_v56 = vld [vmem:[%s4551_s9 + $0x3b8] sm:$0xff]  }
  0x7a   : > { %4094 = vmatmul.mubr.msk.bf16.gmra.mrb[52].mxu0 %vm1163_vm1, %v4398_v58 }
  0x7b   : > { %4222 = vmatmul.mubr.msk.bf16.gmra.mrb[52].mxu1 %vm1163_vm1, %v4399_v59  ;;  %4097 = vmatprep.mubr.msk.bf16.mxu0 %vm1163_vm1, %v4400_v60 }
  0x7c   : > { %4225 = vmatprep.mubr.msk.bf16.mxu1 %vm1163_vm1, %v4401_v61 }
  0x82   : > { %4098 = vmatmul.mubr.msk.bf16.gmra.mrb[56].mxu0 %vm1163_vm1, %v4402_v62  ;;  %v4456_v62 = vld [vmem:[%s4551_s9 + $0x1c0] sm:$0xff]  }
  0x83   : > { %4226 = vmatmul.mubr.msk.bf16.gmra.mrb[56].mxu1 %vm1163_vm1, %v4403_v63  ;;  %4101 = vmatprep.mubr.msk.bf16.mxu0 %vm1163_vm1, %v4404_v0  ;;  %v4457_v63 = vld [vmem:[%s4551_s9 + $0x3c0] sm:$0xff]  }
  0x84   : > { %4229 = vmatprep.mubr.msk.bf16.mxu1 %vm1163_vm1, %v4405_v1 }
  0x8a   : > { %4102 = vmatmul.mubr.msk.bf16.gmra.mrb[60].mxu0 %vm1163_vm1, %v4406_v2 }
  0x8b   : > { %4230 = vmatmul.mubr.msk.bf16.gmra.mrb[60].mxu1 %vm1163_vm1, %v4407_v3  ;;  %4105 = vmatprep.mubr.msk.bf16.mxu0 %vm1163_vm1, %v4408_v4 }
  0x8c   : > { %4233 = vmatprep.mubr.msk.bf16.mxu1 %vm1163_vm1, %v4409_v5 }
  0x92   : > { %4106 = vmatmul.mubr.msk.bf16.gmra.mrb[64].mxu0 %vm1163_vm1, %v4410_v6 }
  0x93   : > { %4234 = vmatmul.mubr.msk.bf16.gmra.mrb[64].mxu1 %vm1163_vm1, %v4411_v7  ;;  %4109 = vmatprep.mubr.msk.bf16.mxu0 %vm1163_vm1, %v4412_v8 }
  0x94   : > { %4237 = vmatprep.mubr.msk.bf16.mxu1 %vm1163_vm1, %v4413_v9 }
  0x9a   : > { %4110 = vmatmul.mubr.msk.bf16.gmra.mrb[68].mxu0 %vm1163_vm1, %v4414_v10 }
  0x9b   : > { %4238 = vmatmul.mubr.msk.bf16.gmra.mrb[68].mxu1 %vm1163_vm1, %v4415_v11  ;;  %4113 = vmatprep.mubr.msk.bf16.mxu0 %vm1163_vm1, %v4416_v12 }
  0x9c   : > { %4241 = vmatprep.mubr.msk.bf16.mxu1 %vm1163_vm1, %v4417_v13 }
  0xa2   : > { %4114 = vmatmul.mubr.msk.bf16.gmra.mrb[72].mxu0 %vm1163_vm1, %v4418_v14 }
  0xa3   : > { %4242 = vmatmul.mubr.msk.bf16.gmra.mrb[72].mxu1 %vm1163_vm1, %v4419_v15  ;;  %4117 = vmatprep.mubr.msk.bf16.mxu0 %vm1163_vm1, %v4420_v16 }
  0xa4   : > { %4245 = vmatprep.mubr.msk.bf16.mxu1 %vm1163_vm1, %v4421_v17 }
  0xaa   : > { %4118 = vmatmul.mubr.msk.bf16.gmra.mrb[76].mxu0 %vm1163_vm1, %v4422_v18 }
  0xab   : > { %4246 = vmatmul.mubr.msk.bf16.gmra.mrb[76].mxu1 %vm1163_vm1, %v4423_v19  ;;  %4121 = vmatprep.mubr.msk.bf16.mxu0 %vm1163_vm1, %v4424_v20 }
  0xac   : > { %4249 = vmatprep.mubr.msk.bf16.mxu1 %vm1163_vm1, %v4425_v21 }
  0xb2   : > { %4122 = vmatmul.mubr.msk.bf16.gmra.mrb[80].mxu0 %vm1163_vm1, %v4426_v22  ;;  %v4458_v22 = vld [vmem:[%s4551_s9 + $0x1c8] sm:$0xff]  }
  0xb3   : > { %4250 = vmatmul.mubr.msk.bf16.gmra.mrb[80].mxu1 %vm1163_vm1, %v4427_v23  ;;  %4125 = vmatprep.mubr.msk.bf16.mxu0 %vm1163_vm1, %v4428_v24  ;;  %v4459_v23 = vld [vmem:[%s4551_s9 + $0x3c8] sm:$0xff]  }
  0xb4   : > { %4253 = vmatprep.mubr.msk.bf16.mxu1 %vm1163_vm1, %v4429_v25 }
  0xba   : > { %4126 = vmatmul.mubr.msk.bf16.gmra.mrb[84].mxu0 %vm1163_vm1, %v4430_v26 }
  0xbb   : > { %4254 = vmatmul.mubr.msk.bf16.gmra.mrb[84].mxu1 %vm1163_vm1, %v4431_v27  ;;  %4129 = vmatprep.mubr.msk.bf16.mxu0 %vm1163_vm1, %v4432_v28 }
  0xbc   : > { %4257 = vmatprep.mubr.msk.bf16.mxu1 %vm1163_vm1, %v4433_v29 }
  0xc2   : > { %4130 = vmatmul.mubr.msk.bf16.gmra.mrb[88].mxu0 %vm1163_vm1, %v4434_v30  ;;  %v4460_v30 = vld [vmem:[%s4551_s9 + $0x1d0] sm:$0xff]  }
  0xc3   : > { %4258 = vmatmul.mubr.msk.bf16.gmra.mrb[88].mxu1 %vm1163_vm1, %v4435_v31  ;;  %4133 = vmatprep.mubr.msk.bf16.mxu0 %vm1163_vm1, %v4436_v32  ;;  %v4461_v31 = vld [vmem:[%s4551_s9 + $0x3d0] sm:$0xff]  }
  0xc4   : > { %4261 = vmatprep.mubr.msk.bf16.mxu1 %vm1163_vm1, %v4437_v33 }
  0xca   : > { %4134 = vmatmul.mubr.msk.bf16.gmra.mrb[92].mxu0 %vm1163_vm1, %v4438_v34 }
  0xcb   : > { %4262 = vmatmul.mubr.msk.bf16.gmra.mrb[92].mxu1 %vm1163_vm1, %v4439_v35  ;;  %4137 = vmatprep.mubr.msk.bf16.mxu0 %vm1163_vm1, %v4440_v36 }
  0xcc   : > { %4265 = vmatprep.mubr.msk.bf16.mxu1 %vm1163_vm1, %v4441_v37 }
  0xd2   : > { %4138 = vmatmul.mubr.msk.bf16.gmra.mrb[96].mxu0 %vm1163_vm1, %v4442_v38 }
  0xd3   : > { %4266 = vmatmul.mubr.msk.bf16.gmra.mrb[96].mxu1 %vm1163_vm1, %v4443_v39  ;;  %4141 = vmatprep.mubr.msk.bf16.mxu0 %vm1163_vm1, %v4444_v40 }
  0xd4   : > { %4269 = vmatprep.mubr.msk.bf16.mxu1 %vm1163_vm1, %v4445_v41 }
  0xda   : > { %4142 = vmatmul.mubr.msk.bf16.gmra.mrb[100].mxu0 %vm1163_vm1, %v4446_v42 }
  0xdb   : > { %4270 = vmatmul.mubr.msk.bf16.gmra.mrb[100].mxu1 %vm1163_vm1, %v4447_v43  ;;  %4145 = vmatprep.mubr.msk.bf16.mxu0 %vm1163_vm1, %v4448_v44 }
  0xdc   : > { %4273 = vmatprep.mubr.msk.bf16.mxu1 %vm1163_vm1, %v4449_v45 }
  0xe2   : > { %4146 = vmatmul.mubr.msk.bf16.gmra.mrb[104].mxu0 %vm1163_vm1, %v4450_v46 }
  0xe3   : > { %4274 = vmatmul.mubr.msk.bf16.gmra.mrb[104].mxu1 %vm1163_vm1, %v4451_v47  ;;  %4149 = vmatprep.mubr.msk.bf16.mxu0 %vm1163_vm1, %v4452_v48 }
  0xe4   : > { %4277 = vmatprep.mubr.msk.bf16.mxu1 %vm1163_vm1, %v4453_v49 }
  0xe5   : > { %v4043_v51 = vpop.f32.mrb[0].mxu0 }
  0xe6   : > { %v4171_v52 = vpop.f32.mrb[0].mxu1  ;;  %v1586_v53 = vpop.f32.mrb[1].mxu0  ;;  %v1595_v2 = vadd.f32 %v4043_v51, %v4776_v50 }
  0xe7   : > { %v2098_v54 = vpop.f32.mrb[1].mxu1  ;;  %v2107_v57 = vadd.f32 %v4171_v52, %v4776_v50  ;;  %v1587_v58 = vadd.f32 %v4776_v50, %v1586_v53  ;;  %v4044_v60 = vpop.f32.mrb[2].mxu0 }
  0xe8   : > { %v2099_v59 = vadd.f32 %v4776_v50, %v2098_v54  ;;  %v4172_v61 = vpop.f32.mrb[2].mxu1  ;;  %v1589_v0 = vpop.f32.mrb[3].mxu0  ;;  %v1598_v6 = vadd.f32 %v4044_v60, %v4776_v50  ;;  %v2611_v12 = vmax.f32 %v1595_v2, 0.0 }
  0xe9   : > { %v2101_v1 = vpop.f32.mrb[3].mxu1  ;;  %v1590_v4 = vadd.f32 %v4776_v50, %v1589_v0  ;;  %v2110_v7 = vadd.f32 %v4172_v61, %v4776_v50  ;;  %v2739_v8 = vmax.f32 %v2107_v57, 0.0  ;;  %v2609_v9 = vmax.f32 %v1587_v58, 0.0 }
  0xea   : > { %v2737_v3 = vmax.f32 %v2099_v59, 0.0  ;;  %v2102_v5 = vadd.f32 %v4776_v50, %v2101_v1  ;;  %4150 = vmatmul.mubr.msk.bf16.gmra.mrb[108].mxu0 %vm1163_vm1, %v4454_v55  ;;  %v2612_v17 = vmax.f32 %v1598_v6, 0.0  ;;  %v4465_v6 = vld [vmem:[%s4551_s9 + $0x3e0] sm:$0xff]  }
  0xeb   : > { %4278 = vmatmul.mubr.msk.bf16.gmra.mrb[108].mxu1 %vm1163_vm1, %v4455_v56  ;;  %v2610_v10 = vmax.f32 %v1590_v4, 0.0  ;;  %4153 = vmatprep.mubr.msk.bf16.mxu0 %vm1163_vm1, %v4456_v62  ;;  %v2740_v18 = vmax.f32 %v2110_v7, 0.0  ;;  %v4462_v56 = vld [vmem:[%s4551_s9 + $0x1d8] sm:$0xff]  }
  0xec   : > { %v2738_v11 = vmax.f32 %v2102_v5, 0.0  ;;  %4281 = vmatprep.mubr.msk.bf16.mxu1 %vm1163_vm1, %v4457_v63  ;;  %v4463_v62 = vld [vmem:[%s4551_s9 + $0x3d8] sm:$0xff]   ;;  %v4464_v63 = vld [vmem:[%s4551_s9 + $0x1e0] sm:$0xff]  }
  0xed   : > { %v2865_v13 = vadd.f32 %v2610_v10, %v2609_v9  ;;  %v4047_v15 = vpop.f32.mrb[4].mxu0 }
  0xee   : > { %v3013_v14 = vadd.f32 %v2738_v11, %v2737_v3  ;;  %v4175_v16 = vpop.f32.mrb[4].mxu1  ;;  %v1602_v20 = vpop.f32.mrb[5].mxu0  ;;  %v1611_v38 = vadd.f32 %v4047_v15, %v4776_v50 }
  0xef   : > { %v2123_v19 = vadd.f32 %v4175_v16, %v4776_v50  ;;  %v2114_v21 = vpop.f32.mrb[5].mxu1  ;;  %v2866_v24 = vadd.f32 %v2865_v13, %v2611_v12  ;;  %v1603_v26 = vadd.f32 %v4776_v50, %v1602_v20  ;;  %v4048_v28 = vpop.f32.mrb[6].mxu0 }
  0xf0   : > { %v3014_v25 = vadd.f32 %v3013_v14, %v2739_v8  ;;  %v2115_v27 = vadd.f32 %v4776_v50, %v2114_v21  ;;  %v4176_v29 = vpop.f32.mrb[6].mxu1  ;;  %v1605_v32 = vpop.f32.mrb[7].mxu0  ;;  %v1614_v44 = vadd.f32 %v4048_v28, %v4776_v50  ;;  %v2615_v51 = vmax.f32 %v1611_v38, 0.0  ;;  %v4466_v28 = vld [vmem:[%s4551_s9 + $0x1e8] sm:$0xff]  }
  0xf1   : > { %v2117_v33 = vpop.f32.mrb[7].mxu1  ;;  %v2613_v34 = vmax.f32 %v1603_v26, 0.0  ;;  %v2867_v35 = vadd.f32 %v2866_v24, %v2612_v17  ;;  %v1606_v39 = vadd.f32 %v4776_v50, %v1605_v32  ;;  %v2743_v41 = vmax.f32 %v2123_v19, 0.0 }
  0xf2   : > { %v2741_v36 = vmax.f32 %v2115_v27, 0.0  ;;  %v3015_v37 = vadd.f32 %v3014_v25, %v2740_v18  ;;  %v2118_v40 = vadd.f32 %v4776_v50, %v2117_v33  ;;  %4154 = vmatmul.mubr.msk.bf16.gmra.mrb[112].mxu0 %vm1163_vm1, %v4458_v22  ;;  %v2126_v45 = vadd.f32 %v4176_v29, %v4776_v50 }
  0xf3   : > { %4282 = vmatmul.mubr.msk.bf16.gmra.mrb[112].mxu1 %vm1163_vm1, %v4459_v23  ;;  %v2868_v42 = vadd.f32 %v2867_v35, %v2613_v34  ;;  %4157 = vmatprep.mubr.msk.bf16.mxu0 %vm1163_vm1, %v4460_v30  ;;  %v2614_v46 = vmax.f32 %v1606_v39, 0.0  ;;  %v2616_v0 = vmax.f32 %v1614_v44, 0.0  ;;  %v4467_v34 = vld [vmem:[%s4551_s9 + $0x3e8] sm:$0xff]   ;;  %v4468_v35 = vld [vmem:[%s4551_s9 + $0x1f0] sm:$0xff]  }
  0xf4   : > { %v3016_v43 = vadd.f32 %v3015_v37, %v2741_v36  ;;  %4285 = vmatprep.mubr.msk.bf16.mxu1 %vm1163_vm1, %v4461_v31  ;;  %v2742_v47 = vmax.f32 %v2118_v40, 0.0  ;;  %v2744_v1 = vmax.f32 %v2126_v45, 0.0 }
  0xf5   : > { %v4051_v48 = vpop.f32.mrb[8].mxu0  ;;  %v2869_v52 = vadd.f32 %v2868_v42, %v2614_v46  ;;  %v4469_v42 = vld [vmem:[%s4551_s9 + $0x3f0] sm:$0xff]  }
  0xf6   : > { %v4179_v49 = vpop.f32.mrb[8].mxu1  ;;  %v3017_v53 = vadd.f32 %v3016_v43, %v2742_v47  ;;  %v1618_v54 = vpop.f32.mrb[9].mxu0  ;;  %v1627_v7 = vadd.f32 %v4051_v48, %v4776_v50 }
  0xf7   : > { %v2130_v55 = vpop.f32.mrb[9].mxu1  ;;  %v2139_v57 = vadd.f32 %v4179_v49, %v4776_v50  ;;  %v1619_v58 = vadd.f32 %v4776_v50, %v1618_v54  ;;  %v4052_v60 = vpop.f32.mrb[10].mxu0  ;;  %v2870_v2 = vadd.f32 %v2869_v52, %v2615_v51 }
  0xf8   : > { %v2131_v59 = vadd.f32 %v4776_v50, %v2130_v55  ;;  %v4180_v61 = vpop.f32.mrb[10].mxu1  ;;  %v3018_v3 = vadd.f32 %v3017_v53, %v2743_v41  ;;  %v1621_v4 = vpop.f32.mrb[11].mxu0  ;;  %v1630_v15 = vadd.f32 %v4052_v60, %v4776_v50  ;;  %v2619_v23 = vmax.f32 %v1627_v7, 0.0  ;;  %v4471_v7 = vld [vmem:[%s4551_s9 + $0x3f8] sm:$0xff]  }
  0xf9   : > { %v2133_v5 = vpop.f32.mrb[11].mxu1  ;;  %v2617_v8 = vmax.f32 %v1619_v58, 0.0  ;;  %v2871_v10 = vadd.f32 %v2870_v2, %v2616_v0  ;;  %v1622_v12 = vadd.f32 %v4776_v50, %v1621_v4  ;;  %v2747_v14 = vmax.f32 %v2139_v57, 0.0 }
  0xfa   : > { %v2745_v9 = vmax.f32 %v2131_v59, 0.0  ;;  %v3019_v11 = vadd.f32 %v3018_v3, %v2744_v1  ;;  %v2134_v13 = vadd.f32 %v4776_v50, %v2133_v5  ;;  %4158 = vmatmul.mubr.msk.bf16.gmra.mrb[116].mxu0 %vm1163_vm1, %v4462_v56  ;;  %v2142_v16 = vadd.f32 %v4180_v61, %v4776_v50  ;;  %v4470_v1 = vld [vmem:[%s4551_s9 + $0x1f8] sm:$0xff]  }
  0xfb   : > { %4286 = vmatmul.mubr.msk.bf16.gmra.mrb[116].mxu1 %vm1163_vm1, %v4463_v62  ;;  %4161 = vmatprep.mubr.msk.bf16.mxu0 %vm1163_vm1, %v4464_v63  ;;  %v2872_v17 = vadd.f32 %v2871_v10, %v2617_v8  ;;  %v2618_v19 = vmax.f32 %v1622_v12, 0.0  ;;  %v2620_v36 = vmax.f32 %v1630_v15, 0.0 }
  0xfc   : > { %v3020_v18 = vadd.f32 %v3019_v11, %v2745_v9  ;;  %v2746_v20 = vmax.f32 %v2134_v13, 0.0  ;;  %4289 = vmatprep.mubr.msk.bf16.mxu1 %vm1163_vm1, %v4465_v6  ;;  %v2748_v37 = vmax.f32 %v2142_v16, 0.0 }
  0xfd   : > { %v4055_v21 = vpop.f32.mrb[12].mxu0  ;;  %v2873_v24 = vadd.f32 %v2872_v17, %v2618_v19 }
  0xfe   : > { %v4183_v22 = vpop.f32.mrb[12].mxu1  ;;  %v3021_v25 = vadd.f32 %v3020_v18, %v2746_v20  ;;  %v1634_v26 = vpop.f32.mrb[13].mxu0  ;;  %v1643_v43 = vadd.f32 %v4055_v21, %v4776_v50 }
  0xff   : > { %v2146_v27 = vpop.f32.mrb[13].mxu1  ;;  %v2155_v29 = vadd.f32 %v4183_v22, %v4776_v50  ;;  %v1635_v30 = vadd.f32 %v4776_v50, %v1634_v26  ;;  %v4056_v32 = vpop.f32.mrb[14].mxu0  ;;  %v2874_v38 = vadd.f32 %v2873_v24, %v2619_v23 }
 0x100   : > { %v2147_v31 = vadd.f32 %v4776_v50, %v2146_v27  ;;  %v4184_v33 = vpop.f32.mrb[14].mxu1  ;;  %v3022_v39 = vadd.f32 %v3021_v25, %v2747_v14  ;;  %v1637_v40 = vpop.f32.mrb[15].mxu0  ;;  %v1646_v52 = vadd.f32 %v4056_v32, %v4776_v50  ;;  %v2623_v60 = vmax.f32 %v1643_v43, 0.0 }
 0x101   : > { %v2149_v41 = vpop.f32.mrb[15].mxu1  ;;  %v2621_v44 = vmax.f32 %v1635_v30, 0.0  ;;  %v2875_v46 = vadd.f32 %v2874_v38, %v2620_v36  ;;  %v1638_v48 = vadd.f32 %v4776_v50, %v1637_v40  ;;  %v2751_v51 = vmax.f32 %v2155_v29, 0.0 }
 0x102   : > { %v2749_v45 = vmax.f32 %v2147_v31, 0.0  ;;  %v3023_v47 = vadd.f32 %v3022_v39, %v2748_v37  ;;  %v2150_v49 = vadd.f32 %v4776_v50, %v2149_v41  ;;  %4162 = vmatmul.mubr.msk.bf16.gmra.mrb[120].mxu0 %vm1163_vm1, %v4466_v28  ;;  %v2158_v53 = vadd.f32 %v4184_v33, %v4776_v50 }
 0x103   : > { %4290 = vmatmul.mubr.msk.bf16.gmra.mrb[120].mxu1 %vm1163_vm1, %v4467_v34  ;;  %4165 = vmatprep.mubr.msk.bf16.mxu0 %vm1163_vm1, %v4468_v35  ;;  %v2876_v54 = vadd.f32 %v2875_v46, %v2621_v44  ;;  %v2622_v56 = vmax.f32 %v1638_v48, 0.0  ;;  %v2624_v8 = vmax.f32 %v1646_v52, 0.0 }
 0x104   : > { %v3024_v55 = vadd.f32 %v3023_v47, %v2749_v45  ;;  %v2750_v57 = vmax.f32 %v2150_v49, 0.0  ;;  %4293 = vmatprep.mubr.msk.bf16.mxu1 %vm1163_vm1, %v4469_v42  ;;  %v2752_v9 = vmax.f32 %v2158_v53, 0.0 }
 0x105   : > { %v4059_v58 = vpop.f32.mrb[16].mxu0  ;;  %v2877_v61 = vadd.f32 %v2876_v54, %v2622_v56 }
 0x106   : > { %v4187_v59 = vpop.f32.mrb[16].mxu1  ;;  %v3025_v62 = vadd.f32 %v3024_v55, %v2750_v57  ;;  %v1650_v63 = vpop.f32.mrb[17].mxu0  ;;  %v1659_v14 = vadd.f32 %v4059_v58, %v4776_v50 }
 0x107   : > { %v2162_v0 = vpop.f32.mrb[17].mxu1  ;;  %v2171_v2 = vadd.f32 %v4187_v59, %v4776_v50  ;;  %v1651_v3 = vadd.f32 %v4776_v50, %v1650_v63  ;;  %v4060_v5 = vpop.f32.mrb[18].mxu0  ;;  %v2878_v10 = vadd.f32 %v2877_v61, %v2623_v60 }
 0x108   : > { %v2163_v4 = vadd.f32 %v4776_v50, %v2162_v0  ;;  %v4188_v6 = vpop.f32.mrb[18].mxu1  ;;  %v3026_v11 = vadd.f32 %v3025_v62, %v2751_v51  ;;  %v1653_v12 = vpop.f32.mrb[19].mxu0  ;;  %v1662_v22 = vadd.f32 %v4060_v5, %v4776_v50  ;;  %v2627_v30 = vmax.f32 %v1659_v14, 0.0 }
 0x109   : > { %v2165_v13 = vpop.f32.mrb[19].mxu1  ;;  %v2625_v15 = vmax.f32 %v1651_v3, 0.0  ;;  %v2879_v17 = vadd.f32 %v2878_v10, %v2624_v8  ;;  %v1654_v19 = vadd.f32 %v4776_v50, %v1653_v12  ;;  %v2755_v21 = vmax.f32 %v2171_v2, 0.0 }
 0x10a   : > { %v2753_v16 = vmax.f32 %v2163_v4, 0.0  ;;  %v3027_v18 = vadd.f32 %v3026_v11, %v2752_v9  ;;  %v2166_v20 = vadd.f32 %v4776_v50, %v2165_v13  ;;  %4166 = vmatmul.mubr.msk.bf16.gmra.mrb[124].mxu0 %vm1163_vm1, %v4470_v1  ;;  %v2174_v23 = vadd.f32 %v4188_v6, %v4776_v50 }
 0x10b   : > { %4294 = vmatmul.mubr.msk.bf16.gmra.mrb[124].mxu1 %vm1163_vm1, %v4471_v7  ;;  %v2880_v24 = vadd.f32 %v2879_v17, %v2625_v15  ;;  %v2626_v26 = vmax.f32 %v1654_v19, 0.0  ;;  %v2628_v40 = vmax.f32 %v1662_v22, 0.0 }
 0x10c   : > { %v3028_v25 = vadd.f32 %v3027_v18, %v2753_v16  ;;  %v2754_v27 = vmax.f32 %v2166_v20, 0.0  ;;  %v2756_v41 = vmax.f32 %v2174_v23, 0.0 }
 0x10d   : > { %v4063_v28 = vpop.f32.mrb[20].mxu0  ;;  %v2881_v31 = vadd.f32 %v2880_v24, %v2626_v26 }
 0x10e   : > { %v4191_v29 = vpop.f32.mrb[20].mxu1  ;;  %v3029_v32 = vadd.f32 %v3028_v25, %v2754_v27  ;;  %v1666_v33 = vpop.f32.mrb[21].mxu0  ;;  %v1675_v46 = vadd.f32 %v4063_v28, %v4776_v50 }
 0x10f   : > { %v2178_v34 = vpop.f32.mrb[21].mxu1  ;;  %v2187_v35 = vadd.f32 %v4191_v29, %v4776_v50  ;;  %v1667_v36 = vadd.f32 %v4776_v50, %v1666_v33  ;;  %v4064_v38 = vpop.f32.mrb[22].mxu0  ;;  %v2882_v42 = vadd.f32 %v2881_v31, %v2627_v30 }
 0x110   : > { %v2179_v37 = vadd.f32 %v4776_v50, %v2178_v34  ;;  %v4192_v39 = vpop.f32.mrb[22].mxu1  ;;  %v3030_v43 = vadd.f32 %v3029_v32, %v2755_v21  ;;  %v1669_v44 = vpop.f32.mrb[23].mxu0  ;;  %v1678_v55 = vadd.f32 %v4064_v38, %v4776_v50  ;;  %v2631_v63 = vmax.f32 %v1675_v46, 0.0 }
 0x111   : > { %v2181_v45 = vpop.f32.mrb[23].mxu1  ;;  %v2629_v47 = vmax.f32 %v1667_v36, 0.0  ;;  %v2883_v49 = vadd.f32 %v2882_v42, %v2628_v40  ;;  %v1670_v52 = vadd.f32 %v4776_v50, %v1669_v44  ;;  %v2759_v54 = vmax.f32 %v2187_v35, 0.0 }
 0x112   : > { %v2757_v48 = vmax.f32 %v2179_v37, 0.0  ;;  %v3031_v51 = vadd.f32 %v3030_v43, %v2756_v41  ;;  %v2182_v53 = vadd.f32 %v4776_v50, %v2181_v45  ;;  %v2190_v56 = vadd.f32 %v4192_v39, %v4776_v50 }
 0x113   : > { %v2884_v57 = vadd.f32 %v2883_v49, %v2629_v47  ;;  %v2630_v59 = vmax.f32 %v1670_v52, 0.0  ;;  %v2632_v9 = vmax.f32 %v1678_v55, 0.0 }
 0x114   : > { %v3032_v58 = vadd.f32 %v3031_v51, %v2757_v48  ;;  %v2758_v60 = vmax.f32 %v2182_v53, 0.0  ;;  %v2760_v10 = vmax.f32 %v2190_v56, 0.0 }
 0x115   : > { %v4067_v61 = vpop.f32.mrb[24].mxu0  ;;  %v2885_v0 = vadd.f32 %v2884_v57, %v2630_v59 }
 0x116   : > { %v4195_v62 = vpop.f32.mrb[24].mxu1  ;;  %v3033_v1 = vadd.f32 %v3032_v58, %v2758_v60  ;;  %v1682_v2 = vpop.f32.mrb[25].mxu0  ;;  %v1691_v15 = vadd.f32 %v4067_v61, %v4776_v50 }
 0x117   : > { %v2194_v3 = vpop.f32.mrb[25].mxu1  ;;  %v2203_v4 = vadd.f32 %v4195_v62, %v4776_v50  ;;  %v1683_v5 = vadd.f32 %v4776_v50, %v1682_v2  ;;  %v4068_v7 = vpop.f32.mrb[26].mxu0  ;;  %v2886_v11 = vadd.f32 %v2885_v0, %v2631_v63 }
 0x118   : > { %v2195_v6 = vadd.f32 %v4776_v50, %v2194_v3  ;;  %v4196_v8 = vpop.f32.mrb[26].mxu1  ;;  %v3034_v12 = vadd.f32 %v3033_v1, %v2759_v54  ;;  %v1685_v13 = vpop.f32.mrb[27].mxu0  ;;  %v1694_v23 = vadd.f32 %v4068_v7, %v4776_v50  ;;  %v2635_v31 = vmax.f32 %v1691_v15, 0.0 }
 0x119   : > { %v2197_v14 = vpop.f32.mrb[27].mxu1  ;;  %v2633_v16 = vmax.f32 %v1683_v5, 0.0  ;;  %v2887_v18 = vadd.f32 %v2886_v11, %v2632_v9  ;;  %v1686_v20 = vadd.f32 %v4776_v50, %v1685_v13  ;;  %v2763_v22 = vmax.f32 %v2203_v4, 0.0 }
 0x11a   : > { %v2761_v17 = vmax.f32 %v2195_v6, 0.0  ;;  %v3035_v19 = vadd.f32 %v3034_v12, %v2760_v10  ;;  %v2198_v21 = vadd.f32 %v4776_v50, %v2197_v14  ;;  %v2206_v24 = vadd.f32 %v4196_v8, %v4776_v50 }
 0x11b   : > { %v2888_v25 = vadd.f32 %v2887_v18, %v2633_v16  ;;  %v2634_v27 = vmax.f32 %v1686_v20, 0.0  ;;  %v2636_v41 = vmax.f32 %v1694_v23, 0.0 }
 0x11c   : > { %v3036_v26 = vadd.f32 %v3035_v19, %v2761_v17  ;;  %v2762_v28 = vmax.f32 %v2198_v21, 0.0  ;;  %v2764_v42 = vmax.f32 %v2206_v24, 0.0 }
 0x11d   : > { %v4071_v29 = vpop.f32.mrb[28].mxu0  ;;  %v2889_v32 = vadd.f32 %v2888_v25, %v2634_v27 }
 0x11e   : > { %v4199_v30 = vpop.f32.mrb[28].mxu1  ;;  %v3037_v33 = vadd.f32 %v3036_v26, %v2762_v28  ;;  %v1698_v34 = vpop.f32.mrb[29].mxu0  ;;  %v1707_v47 = vadd.f32 %v4071_v29, %v4776_v50 }
 0x11f   : > { %v2210_v35 = vpop.f32.mrb[29].mxu1  ;;  %v2219_v36 = vadd.f32 %v4199_v30, %v4776_v50  ;;  %v1699_v37 = vadd.f32 %v4776_v50, %v1698_v34  ;;  %v4072_v39 = vpop.f32.mrb[30].mxu0  ;;  %v2890_v43 = vadd.f32 %v2889_v32, %v2635_v31 }
 0x120   : > { %v2211_v38 = vadd.f32 %v4776_v50, %v2210_v35  ;;  %v4200_v40 = vpop.f32.mrb[30].mxu1  ;;  %v3038_v44 = vadd.f32 %v3037_v33, %v2763_v22  ;;  %v1701_v45 = vpop.f32.mrb[31].mxu0  ;;  %v1710_v56 = vadd.f32 %v4072_v39, %v4776_v50  ;;  %v2639_v0 = vmax.f32 %v1707_v47, 0.0 }
 0x121   : > { %v2213_v46 = vpop.f32.mrb[31].mxu1  ;;  %v2637_v48 = vmax.f32 %v1699_v37, 0.0  ;;  %v2891_v51 = vadd.f32 %v2890_v43, %v2636_v41  ;;  %v1702_v53 = vadd.f32 %v4776_v50, %v1701_v45  ;;  %v2767_v55 = vmax.f32 %v2219_v36, 0.0 }
 0x122   : > { %v2765_v49 = vmax.f32 %v2211_v38, 0.0  ;;  %v3039_v52 = vadd.f32 %v3038_v44, %v2764_v42  ;;  %v2214_v54 = vadd.f32 %v4776_v50, %v2213_v46  ;;  %v2222_v57 = vadd.f32 %v4200_v40, %v4776_v50 }
 0x123   : > { %v2892_v58 = vadd.f32 %v2891_v51, %v2637_v48  ;;  %v2638_v60 = vmax.f32 %v1702_v53, 0.0  ;;  %v2640_v10 = vmax.f32 %v1710_v56, 0.0 }
 0x124   : > { %v3040_v59 = vadd.f32 %v3039_v52, %v2765_v49  ;;  %v2766_v61 = vmax.f32 %v2214_v54, 0.0  ;;  %v2768_v11 = vmax.f32 %v2222_v57, 0.0 }
 0x125   : > { %v4075_v62 = vpop.f32.mrb[32].mxu0  ;;  %v2893_v1 = vadd.f32 %v2892_v58, %v2638_v60 }
 0x126   : > { %v4203_v63 = vpop.f32.mrb[32].mxu1  ;;  %v3041_v2 = vadd.f32 %v3040_v59, %v2766_v61  ;;  %v1714_v3 = vpop.f32.mrb[33].mxu0  ;;  %v1723_v16 = vadd.f32 %v4075_v62, %v4776_v50 }
 0x127   : > { %v2226_v4 = vpop.f32.mrb[33].mxu1  ;;  %v2235_v5 = vadd.f32 %v4203_v63, %v4776_v50  ;;  %v1715_v6 = vadd.f32 %v4776_v50, %v1714_v3  ;;  %v4076_v8 = vpop.f32.mrb[34].mxu0  ;;  %v2894_v12 = vadd.f32 %v2893_v1, %v2639_v0 }
 0x128   : > { %v2227_v7 = vadd.f32 %v4776_v50, %v2226_v4  ;;  %v4204_v9 = vpop.f32.mrb[34].mxu1  ;;  %v3042_v13 = vadd.f32 %v3041_v2, %v2767_v55  ;;  %v1717_v14 = vpop.f32.mrb[35].mxu0  ;;  %v1726_v24 = vadd.f32 %v4076_v8, %v4776_v50  ;;  %v2643_v30 = vmax.f32 %v1723_v16, 0.0 }
 0x129   : > { %v2229_v15 = vpop.f32.mrb[35].mxu1  ;;  %v4882_v18 = vadd.f32 %v2894_v12, %v2640_v10  ;;  %v1718_v20 = vadd.f32 %v4776_v50, %v1717_v14  ;;  %v2771_v22 = vmax.f32 %v2235_v5, 0.0  ;;  %v2641_v23 = vmax.f32 %v1715_v6, 0.0 }
 0x12a   : > { %v2769_v17 = vmax.f32 %v2227_v7, 0.0  ;;  %v4884_v19 = vadd.f32 %v3042_v13, %v2768_v11  ;;  %v2230_v21 = vadd.f32 %v4776_v50, %v2229_v15  ;;  %v2238_v25 = vadd.f32 %v4204_v9, %v4776_v50 }
 0x12b   : > { %v2642_v26 = vmax.f32 %v1718_v20, 0.0  ;;  %v2644_v39 = vmax.f32 %v1726_v24, 0.0 }
 0x12c   : > { %v2770_v27 = vmax.f32 %v2230_v21, 0.0  ;;  %v2772_v40 = vmax.f32 %v2238_v25, 0.0 }
 0x12d   : > { %v4079_v28 = vpop.f32.mrb[36].mxu0  ;;  %v2902_v31 = vadd.f32 %v2642_v26, %v2641_v23 }
 0x12e   : > { %v4207_v29 = vpop.f32.mrb[36].mxu1  ;;  %v3050_v32 = vadd.f32 %v2770_v27, %v2769_v17  ;;  %v1730_v33 = vpop.f32.mrb[37].mxu0  ;;  %v1739_v48 = vadd.f32 %v4079_v28, %v4776_v50 }
 0x12f   : > { %v2242_v34 = vpop.f32.mrb[37].mxu1  ;;  %v1731_v35 = vadd.f32 %v4776_v50, %v1730_v33  ;;  %v4080_v37 = vpop.f32.mrb[38].mxu0  ;;  %v2903_v41 = vadd.f32 %v2902_v31, %v2643_v30  ;;  %v2251_v45 = vadd.f32 %v4207_v29, %v4776_v50 }
 0x130   : > { %v2243_v36 = vadd.f32 %v4776_v50, %v2242_v34  ;;  %v4208_v38 = vpop.f32.mrb[38].mxu1  ;;  %v3051_v42 = vadd.f32 %v3050_v32, %v2771_v22  ;;  %v1733_v43 = vpop.f32.mrb[39].mxu0  ;;  %v1742_v56 = vadd.f32 %v4080_v37, %v4776_v50  ;;  %v2647_v63 = vmax.f32 %v1739_v48, 0.0 }
 0x131   : > { %v2245_v44 = vpop.f32.mrb[39].mxu1  ;;  %v2645_v46 = vmax.f32 %v1731_v35, 0.0  ;;  %v2904_v49 = vadd.f32 %v2903_v41, %v2644_v39  ;;  %v1734_v52 = vadd.f32 %v4776_v50, %v1733_v43  ;;  %v2254_v57 = vadd.f32 %v4208_v38, %v4776_v50 }
 0x132   : > { %v2773_v47 = vmax.f32 %v2243_v36, 0.0  ;;  %v3052_v51 = vadd.f32 %v3051_v42, %v2772_v40  ;;  %v2246_v53 = vadd.f32 %v4776_v50, %v2245_v44  ;;  %v2775_v58 = vmax.f32 %v2251_v45, 0.0 }
 0x133   : > { %v2905_v54 = vadd.f32 %v2904_v49, %v2645_v46  ;;  %v2646_v59 = vmax.f32 %v1734_v52, 0.0  ;;  %v2648_v8 = vmax.f32 %v1742_v56, 0.0  ;;  %v2776_v9 = vmax.f32 %v2254_v57, 0.0 }
 0x134   : > { %v3053_v55 = vadd.f32 %v3052_v51, %v2773_v47  ;;  %v2774_v60 = vmax.f32 %v2246_v53, 0.0 }
 0x135   : > { %v4083_v61 = vpop.f32.mrb[40].mxu0  ;;  %v2906_v2 = vadd.f32 %v2905_v54, %v2646_v59 }
 0x136   : > { %v4211_v62 = vpop.f32.mrb[40].mxu1  ;;  %v1746_v0 = vpop.f32.mrb[41].mxu0  ;;  %v3054_v3 = vadd.f32 %v3053_v55, %v2774_v60  ;;  %v1755_v17 = vadd.f32 %v4083_v61, %v4776_v50 }
 0x137   : > { %v2258_v1 = vpop.f32.mrb[41].mxu1  ;;  %v1747_v4 = vadd.f32 %v4776_v50, %v1746_v0  ;;  %v4084_v6 = vpop.f32.mrb[42].mxu0  ;;  %v2267_v10 = vadd.f32 %v4211_v62, %v4776_v50  ;;  %v2907_v13 = vadd.f32 %v2906_v2, %v2647_v63 }
 0x138   : > { %v2259_v5 = vadd.f32 %v4776_v50, %v2258_v1  ;;  %v4212_v7 = vpop.f32.mrb[42].mxu1  ;;  %v1749_v11 = vpop.f32.mrb[43].mxu0  ;;  %v3055_v14 = vadd.f32 %v3054_v3, %v2775_v58  ;;  %v1758_v24 = vadd.f32 %v4084_v6, %v4776_v50  ;;  %v2651_v33 = vmax.f32 %v1755_v17, 0.0 }
 0x139   : > { %v2261_v12 = vpop.f32.mrb[43].mxu1  ;;  %v2649_v15 = vmax.f32 %v1747_v4, 0.0  ;;  %v1750_v20 = vadd.f32 %v4776_v50, %v1749_v11  ;;  %v2908_v22 = vadd.f32 %v2907_v13, %v2648_v8  ;;  %v2270_v25 = vadd.f32 %v4212_v7, %v4776_v50 }
 0x13a   : > { %v2777_v16 = vmax.f32 %v2259_v5, 0.0  ;;  %v2262_v21 = vadd.f32 %v4776_v50, %v2261_v12  ;;  %v3056_v23 = vadd.f32 %v3055_v14, %v2776_v9  ;;  %v2779_v28 = vmax.f32 %v2267_v10, 0.0 }
 0x13b   : > { %v2650_v26 = vmax.f32 %v1750_v20, 0.0  ;;  %v2909_v29 = vadd.f32 %v2908_v22, %v2649_v15  ;;  %v2652_v42 = vmax.f32 %v1758_v24, 0.0  ;;  %v2780_v43 = vmax.f32 %v2270_v25, 0.0 }
 0x13c   : > { %v2778_v27 = vmax.f32 %v2262_v21, 0.0  ;;  %v3057_v30 = vadd.f32 %v3056_v23, %v2777_v16 }
 0x13d   : > { %v4087_v31 = vpop.f32.mrb[44].mxu0  ;;  %v2910_v36 = vadd.f32 %v2909_v29, %v2650_v26 }
 0x13e   : > { %v4215_v32 = vpop.f32.mrb[44].mxu1  ;;  %v1762_v34 = vpop.f32.mrb[45].mxu0  ;;  %v3058_v37 = vadd.f32 %v3057_v30, %v2778_v27  ;;  %v1771_v52 = vadd.f32 %v4087_v31, %v4776_v50 }
 0x13f   : > { %v2274_v35 = vpop.f32.mrb[45].mxu1  ;;  %v1763_v38 = vadd.f32 %v4776_v50, %v1762_v34  ;;  %v4088_v40 = vpop.f32.mrb[46].mxu0  ;;  %v2283_v44 = vadd.f32 %v4215_v32, %v4776_v50  ;;  %v2911_v47 = vadd.f32 %v2910_v36, %v2651_v33 }
 0x140   : > { %v2275_v39 = vadd.f32 %v4776_v50, %v2274_v35  ;;  %v4216_v41 = vpop.f32.mrb[46].mxu1  ;;  %v1765_v45 = vpop.f32.mrb[47].mxu0  ;;  %v3059_v48 = vadd.f32 %v3058_v37, %v2779_v28  ;;  %v1774_v57 = vadd.f32 %v4088_v40, %v4776_v50  ;;  %v2655_v2 = vmax.f32 %v1771_v52, 0.0 }
 0x141   : > { %v2277_v46 = vpop.f32.mrb[47].mxu1  ;;  %v2653_v49 = vmax.f32 %v1763_v38, 0.0  ;;  %v1766_v53 = vadd.f32 %v4776_v50, %v1765_v45  ;;  %v2912_v55 = vadd.f32 %v2911_v47, %v2652_v42  ;;  %v2286_v58 = vadd.f32 %v4216_v41, %v4776_v50 }
 0x142   : > { %v2781_v51 = vmax.f32 %v2275_v39, 0.0  ;;  %v2278_v54 = vadd.f32 %v4776_v50, %v2277_v46  ;;  %v3060_v56 = vadd.f32 %v3059_v48, %v2780_v43  ;;  %v2783_v61 = vmax.f32 %v2283_v44, 0.0 }
 0x143   : > { %v2654_v59 = vmax.f32 %v1766_v53, 0.0  ;;  %v2913_v62 = vadd.f32 %v2912_v55, %v2653_v49  ;;  %v2656_v11 = vmax.f32 %v1774_v57, 0.0  ;;  %v2784_v12 = vmax.f32 %v2286_v58, 0.0 }
 0x144   : > { %v2782_v60 = vmax.f32 %v2278_v54, 0.0  ;;  %v3061_v63 = vadd.f32 %v3060_v56, %v2781_v51 }
 0x145   : > { %v4091_v0 = vpop.f32.mrb[48].mxu0  ;;  %v2914_v5 = vadd.f32 %v2913_v62, %v2654_v59 }
 0x146   : > { %v4219_v1 = vpop.f32.mrb[48].mxu1  ;;  %v1778_v3 = vpop.f32.mrb[49].mxu0  ;;  %v3062_v6 = vadd.f32 %v3061_v63, %v2782_v60  ;;  %v1787_v22 = vadd.f32 %v4091_v0, %v4776_v50 }
 0x147   : > { %v2290_v4 = vpop.f32.mrb[49].mxu1  ;;  %v1779_v7 = vadd.f32 %v4776_v50, %v1778_v3  ;;  %v4092_v9 = vpop.f32.mrb[50].mxu0  ;;  %v2299_v13 = vadd.f32 %v4219_v1, %v4776_v50  ;;  %v2915_v16 = vadd.f32 %v2914_v5, %v2655_v2 }
 0x148   : > { %v2291_v8 = vadd.f32 %v4776_v50, %v2290_v4  ;;  %v4220_v10 = vpop.f32.mrb[50].mxu1  ;;  %v1781_v14 = vpop.f32.mrb[51].mxu0  ;;  %v3063_v17 = vadd.f32 %v3062_v6, %v2783_v61  ;;  %v1790_v27 = vadd.f32 %v4092_v9, %v4776_v50  ;;  %v2659_v36 = vmax.f32 %v1787_v22, 0.0 }
 0x149   : > { %v2293_v15 = vpop.f32.mrb[51].mxu1  ;;  %v2657_v20 = vmax.f32 %v1779_v7, 0.0  ;;  %v1782_v23 = vadd.f32 %v4776_v50, %v1781_v14  ;;  %v2916_v25 = vadd.f32 %v2915_v16, %v2656_v11  ;;  %v2302_v28 = vadd.f32 %v4220_v10, %v4776_v50 }
 0x14a   : > { %v2785_v21 = vmax.f32 %v2291_v8, 0.0  ;;  %v2294_v24 = vadd.f32 %v4776_v50, %v2293_v15  ;;  %v3064_v26 = vadd.f32 %v3063_v17, %v2784_v12  ;;  %v2787_v31 = vmax.f32 %v2299_v13, 0.0 }
 0x14b   : > { %v2658_v29 = vmax.f32 %v1782_v23, 0.0  ;;  %v2917_v32 = vadd.f32 %v2916_v25, %v2657_v20  ;;  %v2660_v45 = vmax.f32 %v1790_v27, 0.0  ;;  %v2788_v46 = vmax.f32 %v2302_v28, 0.0 }
 0x14c   : > { %v2786_v30 = vmax.f32 %v2294_v24, 0.0  ;;  %v3065_v33 = vadd.f32 %v3064_v26, %v2785_v21  ;;  %v2896_v28 = vrot.slane %v4882_v18, 4 }
 0x14d   : > { %v4095_v34 = vpop.f32.mrb[52].mxu0  ;;  %v2918_v39 = vadd.f32 %v2917_v32, %v2658_v29 }
 0x14e   : > { %v4223_v35 = vpop.f32.mrb[52].mxu1  ;;  %v1794_v37 = vpop.f32.mrb[53].mxu0  ;;  %v3066_v40 = vadd.f32 %v3065_v33, %v2786_v30  ;;  %v1803_v55 = vadd.f32 %v4095_v34, %v4776_v50 }
 0x14f   : > { %v2306_v38 = vpop.f32.mrb[53].mxu1  ;;  %v1795_v41 = vadd.f32 %v4776_v50, %v1794_v37  ;;  %v4096_v43 = vpop.f32.mrb[54].mxu0  ;;  %v2315_v47 = vadd.f32 %v4223_v35, %v4776_v50  ;;  %v2919_v51 = vadd.f32 %v2918_v39, %v2659_v36 }
 0x150   : > { %v2307_v42 = vadd.f32 %v4776_v50, %v2306_v38  ;;  %v4224_v44 = vpop.f32.mrb[54].mxu1  ;;  %v1797_v48 = vpop.f32.mrb[55].mxu0  ;;  %v3067_v52 = vadd.f32 %v3066_v40, %v2787_v31  ;;  %v1806_v60 = vadd.f32 %v4096_v43, %v4776_v50  ;;  %v2663_v5 = vmax.f32 %v1803_v55, 0.0 }
 0x151   : > { %v2309_v49 = vpop.f32.mrb[55].mxu1  ;;  %v2661_v53 = vmax.f32 %v1795_v41, 0.0  ;;  %v1798_v56 = vadd.f32 %v4776_v50, %v1797_v48  ;;  %v2920_v58 = vadd.f32 %v2919_v51, %v2660_v45  ;;  %v2318_v61 = vadd.f32 %v4224_v44, %v4776_v50  ;;  %v4942_v45 = vld [vmem:[%s5159_s2] ss:$0 sm:$0xff] }
 0x152   : > { %v2789_v54 = vmax.f32 %v2307_v42, 0.0  ;;  %v2310_v57 = vadd.f32 %v4776_v50, %v2309_v49  ;;  %v3068_v59 = vadd.f32 %v3067_v52, %v2788_v46  ;;  %v2791_v0 = vmax.f32 %v2315_v47, 0.0 }
 0x153   : > { %v2662_v62 = vmax.f32 %v1798_v56, 0.0  ;;  %v2921_v1 = vadd.f32 %v2920_v58, %v2661_v53  ;;  %v2664_v14 = vmax.f32 %v1806_v60, 0.0  ;;  %v2792_v15 = vmax.f32 %v2318_v61, 0.0 }
 0x154   : > { %v2790_v63 = vmax.f32 %v2310_v57, 0.0  ;;  %v3069_v2 = vadd.f32 %v3068_v59, %v2789_v54  ;;  %v2897_v49 = vadd.f32 %v2896_v28, %v4882_v18 }
 0x155   : > { %v4099_v3 = vpop.f32.mrb[56].mxu0  ;;  %v2922_v8 = vadd.f32 %v2921_v1, %v2662_v62 }
 0x156   : > { %v4227_v4 = vpop.f32.mrb[56].mxu1  ;;  %v1810_v6 = vpop.f32.mrb[57].mxu0  ;;  %v3070_v9 = vadd.f32 %v3069_v2, %v2790_v63  ;;  %v1819_v25 = vadd.f32 %v4099_v3, %v4776_v50  ;;  %v2898_v1 = vrot.slane %v2897_v49, 2 }
 0x157   : > { %v2322_v7 = vpop.f32.mrb[57].mxu1  ;;  %v1811_v10 = vadd.f32 %v4776_v50, %v1810_v6  ;;  %v4100_v12 = vpop.f32.mrb[58].mxu0  ;;  %v2331_v16 = vadd.f32 %v4227_v4, %v4776_v50  ;;  %v2923_v21 = vadd.f32 %v2922_v8, %v2663_v5 }
 0x158   : > { %v2323_v11 = vadd.f32 %v4776_v50, %v2322_v7  ;;  %v4228_v13 = vpop.f32.mrb[58].mxu1  ;;  %v1813_v17 = vpop.f32.mrb[59].mxu0  ;;  %v3071_v22 = vadd.f32 %v3070_v9, %v2791_v0  ;;  %v1822_v31 = vadd.f32 %v4100_v12, %v4776_v50  ;;  %v2667_v40 = vmax.f32 %v1819_v25, 0.0 }
 0x159   : > { %v2325_v20 = vpop.f32.mrb[59].mxu1  ;;  %v2665_v23 = vmax.f32 %v1811_v10, 0.0  ;;  %v1814_v26 = vadd.f32 %v4776_v50, %v1813_v17  ;;  %v2924_v29 = vadd.f32 %v2923_v21, %v2664_v14  ;;  %v2334_v32 = vadd.f32 %v4228_v13, %v4776_v50 }
 0x15a   : > { %v2793_v24 = vmax.f32 %v2323_v11, 0.0  ;;  %v2326_v27 = vadd.f32 %v4776_v50, %v2325_v20  ;;  %v3072_v30 = vadd.f32 %v3071_v22, %v2792_v15  ;;  %v2795_v35 = vmax.f32 %v2331_v16, 0.0 }
 0x15b   : > { %v2666_v33 = vmax.f32 %v1814_v26, 0.0  ;;  %v2925_v36 = vadd.f32 %v2924_v29, %v2665_v23  ;;  %v2668_v51 = vmax.f32 %v1822_v31, 0.0  ;;  %v2796_v52 = vmax.f32 %v2334_v32, 0.0 }
 0x15c   : > { %v2794_v34 = vmax.f32 %v2326_v27, 0.0  ;;  %v3073_v37 = vadd.f32 %v3072_v30, %v2793_v24  ;;  %v2899_v21 = vadd.f32 %v2898_v1, %v2897_v49 }
 0x15d   : > { %v4103_v38 = vpop.f32.mrb[60].mxu0  ;;  %v2926_v43 = vadd.f32 %v2925_v36, %v2666_v33 }
 0x15e   : > { %v4231_v39 = vpop.f32.mrb[60].mxu1  ;;  %v1826_v41 = vpop.f32.mrb[61].mxu0  ;;  %v3074_v44 = vadd.f32 %v3073_v37, %v2794_v34  ;;  %v1835_v60 = vadd.f32 %v4942_v45, %v4103_v38 }
 0x15f   : > { %v2338_v42 = vpop.f32.mrb[61].mxu1  ;;  %v1827_v46 = vadd.f32 %v4942_v45, %v1826_v41  ;;  %v4104_v47 = vpop.f32.mrb[62].mxu0  ;;  %v2347_v53 = vadd.f32 %v4942_v45, %v4231_v39  ;;  %v2927_v56 = vadd.f32 %v2926_v43, %v2667_v40 }
 0x160   : > { %v2339_v50 = vadd.f32 %v4942_v45, %v2338_v42  ;;  %v4232_v48 = vpop.f32.mrb[62].mxu1  ;;  %v1829_v54 = vpop.f32.mrb[63].mxu0  ;;  %v3075_v57 = vadd.f32 %v3074_v44, %v2795_v35  ;;  %v1838_v6 = vadd.f32 %v4942_v45, %v4104_v47  ;;  %v2671_v10 = vmax.f32 %v1835_v60, 0.0 }
 0x161   : > { %v2341_v55 = vpop.f32.mrb[63].mxu1  ;;  %v2669_v58 = vmax.f32 %v1827_v46, 0.0  ;;  %v1830_v61 = vadd.f32 %v4942_v45, %v1829_v54  ;;  %v2928_v63 = vadd.f32 %v2927_v56, %v2668_v51  ;;  %v2799_v18 = vmax.f32 %v2347_v53, 0.0 }
 0x162   : > { %v2797_v59 = vmax.f32 %v2339_v50, 0.0  ;;  %v2342_v62 = vadd.f32 %v4942_v45, %v2341_v55  ;;  %v3076_v0 = vadd.f32 %v3075_v57, %v2796_v52  ;;  %v2350_v7 = vadd.f32 %v4942_v45, %v4232_v48 }
 0x163   : > { %v2670_v2 = vmax.f32 %v1830_v61, 0.0  ;;  %v2929_v4 = vadd.f32 %v2928_v63, %v2669_v58  ;;  %v2672_v25 = vmax.f32 %v1838_v6, 0.0  ;;  %v2900_v44 = vrot.slane %v2899_v21, 1 }
 0x164   : > { %v2798_v3 = vmax.f32 %v2342_v62, 0.0  ;;  %v3077_v5 = vadd.f32 %v3076_v0, %v2797_v59  ;;  %v2800_v26 = vmax.f32 %v2350_v7, 0.0 }
 0x165   : > { %v4107_v8 = vpop.f32.mrb[64].mxu0  ;;  %v2930_v13 = vadd.f32 %v2929_v4, %v2670_v2 }
 0x166   : > { %v4235_v9 = vpop.f32.mrb[64].mxu1  ;;  %v1842_v11 = vpop.f32.mrb[65].mxu0  ;;  %v3078_v14 = vadd.f32 %v3077_v5, %v2798_v3  ;;  %v1851_v29 = vadd.f32 %v4942_v45, %v4107_v8 }
 0x167   : > { %v2354_v12 = vpop.f32.mrb[65].mxu1  ;;  %v2363_v15 = vadd.f32 %v4942_v45, %v4235_v9  ;;  %v4108_v17 = vpop.f32.mrb[66].mxu0  ;;  %v1843_v22 = vadd.f32 %v4942_v45, %v1842_v11  ;;  %v2931_v27 = vadd.f32 %v2930_v13, %v2671_v10 }
 0x168   : > { %v2355_v16 = vadd.f32 %v4942_v45, %v2354_v12  ;;  %v4236_v20 = vpop.f32.mrb[66].mxu1  ;;  %v1845_v23 = vpop.f32.mrb[67].mxu0  ;;  %v3079_v28 = vadd.f32 %v3078_v14, %v2799_v18  ;;  %v1854_v36 = vadd.f32 %v4942_v45, %v4108_v17  ;;  %v2675_v46 = vmax.f32 %v1851_v29, 0.0 }
 0x169   : > { %v2357_v24 = vpop.f32.mrb[67].mxu1  ;;  %v1846_v31 = vadd.f32 %v4942_v45, %v1845_v23  ;;  %v2932_v33 = vadd.f32 %v2931_v27, %v2672_v25  ;;  %v2803_v35 = vmax.f32 %v2363_v15, 0.0  ;;  %v2673_v37 = vmax.f32 %v1843_v22, 0.0 }
 0x16a   : > { %v2801_v30 = vmax.f32 %v2355_v16, 0.0  ;;  %v2358_v32 = vadd.f32 %v4942_v45, %v2357_v24  ;;  %v4959_v34 = vadd.f32 %v3079_v28, %v2800_v26  ;;  %v2366_v38 = vadd.f32 %v4942_v45, %v4236_v20 }
 0x16b   : > { %v2674_v39 = vmax.f32 %v1846_v31, 0.0  ;;  %v2933_v41 = vrot.slane %v2932_v33, 4  ;;  %v2676_v52 = vmax.f32 %v1854_v36, 0.0  ;;  %v2901_v18 = vadd.f32 %v2900_v44, %v2899_v21 }
 0x16c   : > { %v2802_v40 = vmax.f32 %v2358_v32, 0.0  ;;  %v2804_v57 = vmax.f32 %v2366_v38, 0.0 }
 0x16d   : > { %v4111_v42 = vpop.f32.mrb[68].mxu0  ;;  %v2939_v50 = vadd.f32 %v2674_v39, %v2673_v37  ;;  %v2934_v51 = vadd.f32 %v2933_v41, %v2932_v33  ;;  %v3162_v28 = vmul.f32 0.00390625, %v2901_v18 }
 0x16e   : > { %v4239_v43 = vpop.f32.mrb[68].mxu1  ;;  %v3087_v47 = vadd.f32 %v2802_v40, %v2801_v30  ;;  %v1858_v48 = vpop.f32.mrb[69].mxu0  ;;  %v1867_v5 = vadd.f32 %v4942_v45, %v4111_v42 }
 0x16f   : > { %v2370_v49 = vpop.f32.mrb[69].mxu1  ;;  %v1859_v53 = vadd.f32 %v4942_v45, %v1858_v48  ;;  %v4112_v55 = vpop.f32.mrb[70].mxu0  ;;  %v2940_v58 = vadd.f32 %v2939_v50, %v2675_v46  ;;  %v2379_v60 = vadd.f32 %v4942_v45, %v4239_v43  ;;  %v2935_v63 = vrot.slane %v2934_v51, 2 }
 0x170   : > { %v2371_v54 = vadd.f32 %v4942_v45, %v2370_v49  ;;  %v4240_v56 = vpop.f32.mrb[70].mxu1  ;;  %v3088_v59 = vadd.f32 %v3087_v47, %v2803_v35  ;;  %v1861_v61 = vpop.f32.mrb[71].mxu0  ;;  %v1870_v11 = vadd.f32 %v4942_v45, %v4112_v55  ;;  %v2679_v23 = vmax.f32 %v1867_v5, 0.0 }
 0x171   : > { %v2373_v62 = vpop.f32.mrb[71].mxu1  ;;  %v2677_v0 = vmax.f32 %v1859_v53, 0.0  ;;  %v2941_v2 = vadd.f32 %v2940_v58, %v2676_v52  ;;  %v2936_v4 = vadd.f32 %v2935_v63, %v2934_v51  ;;  %v1862_v6 = vadd.f32 %v4942_v45, %v1861_v61 }
 0x172   : > { %v2805_v1 = vmax.f32 %v2371_v54, 0.0  ;;  %v3089_v3 = vadd.f32 %v3088_v59, %v2804_v57  ;;  %v2374_v7 = vadd.f32 %v4942_v45, %v2373_v62  ;;  %v2807_v8 = vmax.f32 %v2379_v60, 0.0 }
 0x173   : > { %v2942_v9 = vadd.f32 %v2941_v2, %v2677_v0  ;;  %v2937_v12 = vrot.slane %v2936_v4, 1  ;;  %v2382_v13 = vadd.f32 %v4942_v45, %v4240_v56  ;;  %v2678_v14 = vmax.f32 %v1862_v6, 0.0 }
 0x174   : > { %v3090_v10 = vadd.f32 %v3089_v3, %v2805_v1  ;;  %v2806_v15 = vmax.f32 %v2374_v7, 0.0  ;;  %v2680_v29 = vmax.f32 %v1870_v11, 0.0 }
 0x175   : > { %v4115_v16 = vpop.f32.mrb[72].mxu0  ;;  %v2938_v22 = vadd.f32 %v2937_v12, %v2936_v4  ;;  %v2943_v24 = vadd.f32 %v2942_v9, %v2678_v14  ;;  %v2808_v36 = vmax.f32 %v2382_v13, 0.0 }
 0x176   : > { %v4243_v17 = vpop.f32.mrb[72].mxu1  ;;  %v1874_v20 = vpop.f32.mrb[73].mxu0  ;;  %v3091_v25 = vadd.f32 %v3090_v10, %v2806_v15  ;;  %v1883_v39 = vadd.f32 %v4942_v45, %v4115_v16 }
 0x177   : > { %v2386_v21 = vpop.f32.mrb[73].mxu1  ;;  %v4116_v26 = vpop.f32.mrb[74].mxu0  ;;  %v1875_v30 = vadd.f32 %v4942_v45, %v1874_v20  ;;  %v3163_v35 = vmul.f32 0.00390625, %v2938_v22  ;;  %v2944_v37 = vadd.f32 %v2943_v24, %v2679_v23  ;;  %v2395_v40 = vadd.f32 %v4942_v45, %v4243_v17 }
 0x178   : > { %v4244_v27 = vpop.f32.mrb[74].mxu1  ;;  %v2387_v31 = vadd.f32 %v4942_v45, %v2386_v21  ;;  %v1877_v32 = vpop.f32.mrb[75].mxu0  ;;  %v3092_v38 = vadd.f32 %v3091_v25, %v2807_v8  ;;  %v1886_v47 = vadd.f32 %v4942_v45, %v4116_v26  ;;  %v2683_v60 = vmax.f32 %v1883_v39, 0.0 }
 0x179   : > { %v2389_v33 = vpop.f32.mrb[75].mxu1  ;;  %v2681_v41 = vmax.f32 %v1875_v30, 0.0  ;;  %v4976_v43 = vsel %vm3179_vm2, %v3163_v35, %v3162_v28  ;;  %v2945_v44 = vadd.f32 %v2944_v37, %v2680_v29  ;;  %v1878_v50 = vadd.f32 %v4942_v45, %v1877_v32 }
 0x17a   : > { %v2809_v42 = vmax.f32 %v2387_v31, 0.0  ;;  %v3093_v46 = vadd.f32 %v3092_v38, %v2808_v36  ;;  %v2390_v48 = vadd.f32 %v4942_v45, %v2389_v33  ;;  %v2398_v52 = vadd.f32 %v4942_v45, %v4244_v27 }
 0x17b   : > { %v2946_v49 = vadd.f32 %v2945_v44, %v2681_v41  ;;  %v2682_v53 = vmax.f32 %v1878_v50, 0.0  ;;  %v2811_v56 = vmax.f32 %v2395_v40, 0.0  ;;  %v2684_v18 = vmax.f32 %v1886_v47, 0.0 }
 0x17c   : > { %v3094_v51 = vadd.f32 %v3093_v46, %v2809_v42  ;;  %v2810_v57 = vmax.f32 %v2390_v48, 0.0  ;;  %v2812_v5 = vmax.f32 %v2398_v52, 0.0 }
 0x17d   : > { %v4119_v54 = vpop.f32.mrb[76].mxu0  ;;  %v2947_v61 = vadd.f32 %v2946_v49, %v2682_v53 }
 0x17e   : > { %v4247_v55 = vpop.f32.mrb[76].mxu1  ;;  %v1890_v58 = vpop.f32.mrb[77].mxu0  ;;  %v3095_v2 = vadd.f32 %v3094_v51, %v2810_v57  ;;  %v1899_v13 = vadd.f32 %v4942_v45, %v4119_v54 }
 0x17f   : > { %v2402_v59 = vpop.f32.mrb[77].mxu1  ;;  %v1891_v62 = vadd.f32 %v4942_v45, %v1890_v58  ;;  %v4120_v0 = vpop.f32.mrb[78].mxu0  ;;  %v2948_v6 = vadd.f32 %v2947_v61, %v2683_v60  ;;  %v2411_v7 = vadd.f32 %v4942_v45, %v4247_v55 }
 0x180   : > { %v2403_v63 = vadd.f32 %v4942_v45, %v2402_v59  ;;  %v4248_v1 = vpop.f32.mrb[78].mxu1  ;;  %v1893_v3 = vpop.f32.mrb[79].mxu0  ;;  %v3096_v9 = vadd.f32 %v3095_v2, %v2811_v56  ;;  %v1902_v16 = vadd.f32 %v4942_v45, %v4120_v0  ;;  %v2687_v29 = vmax.f32 %v1899_v13, 0.0 }
 0x181   : > { %v2405_v4 = vpop.f32.mrb[79].mxu1  ;;  %v2685_v8 = vmax.f32 %v1891_v62, 0.0  ;;  %v1894_v11 = vadd.f32 %v4942_v45, %v1893_v3  ;;  %v2949_v14 = vadd.f32 %v2948_v6, %v2684_v18  ;;  %v2414_v22 = vadd.f32 %v4942_v45, %v4248_v1 }
 0x182   : > { %v2813_v10 = vmax.f32 %v2403_v63, 0.0  ;;  %v2406_v12 = vadd.f32 %v4942_v45, %v2405_v4  ;;  %v3097_v15 = vadd.f32 %v3096_v9, %v2812_v5  ;;  %v2815_v25 = vmax.f32 %v2411_v7, 0.0 }
 0x183   : > { %v2686_v17 = vmax.f32 %v1894_v11, 0.0  ;;  %v2950_v21 = vadd.f32 %v2949_v14, %v2685_v8  ;;  %v2688_v36 = vmax.f32 %v1902_v16, 0.0  ;;  %v2816_v40 = vmax.f32 %v2414_v22, 0.0 }
 0x184   : > { %v2814_v20 = vmax.f32 %v2406_v12, 0.0  ;;  %v3098_v26 = vadd.f32 %v3097_v15, %v2813_v10 }
 0x185   : > { %v4123_v23 = vpop.f32.mrb[80].mxu0  ;;  %v2951_v30 = vadd.f32 %v2950_v21, %v2686_v17 }
 0x186   : > { %v4251_v24 = vpop.f32.mrb[80].mxu1  ;;  %v1906_v27 = vpop.f32.mrb[81].mxu0  ;;  %v3099_v37 = vadd.f32 %v3098_v26, %v2814_v20  ;;  %v1915_v49 = vadd.f32 %v4942_v45, %v4123_v23 }
 0x187   : > { %v2418_v28 = vpop.f32.mrb[81].mxu1  ;;  %v1907_v31 = vadd.f32 %v4942_v45, %v1906_v27  ;;  %v4124_v33 = vpop.f32.mrb[82].mxu0  ;;  %v2952_v41 = vadd.f32 %v2951_v30, %v2687_v29  ;;  %v2427_v42 = vadd.f32 %v4942_v45, %v4251_v24 }
 0x188   : > { %v2419_v32 = vadd.f32 %v4942_v45, %v2418_v28  ;;  %v4252_v35 = vpop.f32.mrb[82].mxu1  ;;  %v1909_v38 = vpop.f32.mrb[83].mxu0  ;;  %v3100_v46 = vadd.f32 %v3099_v37, %v2815_v25  ;;  %v1918_v53 = vadd.f32 %v4942_v45, %v4124_v33  ;;  %v2691_v0 = vmax.f32 %v1915_v49, 0.0 }
 0x189   : > { %v2421_v39 = vpop.f32.mrb[83].mxu1  ;;  %v2689_v44 = vmax.f32 %v1907_v31, 0.0  ;;  %v1910_v47 = vadd.f32 %v4942_v45, %v1909_v38  ;;  %v2953_v51 = vadd.f32 %v2952_v41, %v2688_v36  ;;  %v2430_v57 = vadd.f32 %v4942_v45, %v4252_v35 }
 0x18a   : > { %v2817_v50 = vmax.f32 %v2419_v32, 0.0  ;;  %v2422_v48 = vadd.f32 %v4942_v45, %v2421_v39  ;;  %v3101_v52 = vadd.f32 %v3100_v46, %v2816_v40  ;;  %v2819_v60 = vmax.f32 %v2427_v42, 0.0 }
 0x18b   : > { %v2690_v54 = vmax.f32 %v1910_v47, 0.0  ;;  %v2954_v56 = vadd.f32 %v2953_v51, %v2689_v44  ;;  %v2692_v5 = vmax.f32 %v1918_v53, 0.0  ;;  %v2820_v9 = vmax.f32 %v2430_v57, 0.0 }
 0x18c   : > { %v2818_v55 = vmax.f32 %v2422_v48, 0.0  ;;  %v3102_v61 = vadd.f32 %v3101_v52, %v2817_v50 }
 0x18d   : > { %v4127_v58 = vpop.f32.mrb[84].mxu0  ;;  %v2955_v1 = vadd.f32 %v2954_v56, %v2690_v54 }
 0x18e   : > { %v4255_v59 = vpop.f32.mrb[84].mxu1  ;;  %v1922_v62 = vpop.f32.mrb[85].mxu0  ;;  %v3103_v6 = vadd.f32 %v3102_v61, %v2818_v55  ;;  %v1931_v17 = vadd.f32 %v4942_v45, %v4127_v58 }
 0x18f   : > { %v2434_v63 = vpop.f32.mrb[85].mxu1  ;;  %v1923_v18 = vadd.f32 %v4942_v45, %v1922_v62  ;;  %v4128_v3 = vpop.f32.mrb[86].mxu0  ;;  %v2956_v10 = vadd.f32 %v2955_v1, %v2691_v0  ;;  %v2443_v11 = vadd.f32 %v4942_v45, %v4255_v59 }
 0x190   : > { %v2435_v2 = vadd.f32 %v4942_v45, %v2434_v63  ;;  %v4256_v4 = vpop.f32.mrb[86].mxu1  ;;  %v1925_v7 = vpop.f32.mrb[87].mxu0  ;;  %v3104_v13 = vadd.f32 %v3103_v6, %v2819_v60  ;;  %v1934_v22 = vadd.f32 %v4942_v45, %v4128_v3  ;;  %v2695_v33 = vmax.f32 %v1931_v17, 0.0 }
 0x191   : > { %v2437_v8 = vpop.f32.mrb[87].mxu1  ;;  %v2693_v12 = vmax.f32 %v1923_v18, 0.0  ;;  %v1926_v15 = vadd.f32 %v4942_v45, %v1925_v7  ;;  %v2957_v20 = vadd.f32 %v2956_v10, %v2692_v5  ;;  %v2446_v26 = vadd.f32 %v4942_v45, %v4256_v4 }
 0x192   : > { %v2821_v14 = vmax.f32 %v2435_v2, 0.0  ;;  %v2438_v16 = vadd.f32 %v4942_v45, %v2437_v8  ;;  %v3105_v21 = vadd.f32 %v3104_v13, %v2820_v9  ;;  %v2823_v29 = vmax.f32 %v2443_v11, 0.0 }
 0x193   : > { %v2694_v23 = vmax.f32 %v1926_v15, 0.0  ;;  %v2958_v25 = vadd.f32 %v2957_v20, %v2693_v12  ;;  %v2696_v40 = vmax.f32 %v1934_v22, 0.0  ;;  %v2824_v46 = vmax.f32 %v2446_v26, 0.0 }
 0x194   : > { %v2822_v24 = vmax.f32 %v2438_v16, 0.0  ;;  %v3106_v30 = vadd.f32 %v3105_v21, %v2821_v14 }
 0x195   : > { %v4131_v27 = vpop.f32.mrb[88].mxu0  ;;  %v2959_v35 = vadd.f32 %v2958_v25, %v2694_v23 }
 0x196   : > { %v4259_v28 = vpop.f32.mrb[88].mxu1  ;;  %v1938_v31 = vpop.f32.mrb[89].mxu0  ;;  %v3107_v41 = vadd.f32 %v3106_v30, %v2822_v24  ;;  %v1947_v54 = vadd.f32 %v4942_v45, %v4131_v27 }
 0x197   : > { %v2450_v32 = vpop.f32.mrb[89].mxu1  ;;  %v1939_v36 = vadd.f32 %v4942_v45, %v1938_v31  ;;  %v4132_v38 = vpop.f32.mrb[90].mxu0  ;;  %v2960_v50 = vadd.f32 %v2959_v35, %v2695_v33  ;;  %v2459_v47 = vadd.f32 %v4942_v45, %v4259_v28 }
 0x198   : > { %v2451_v37 = vadd.f32 %v4942_v45, %v2450_v32  ;;  %v4260_v39 = vpop.f32.mrb[90].mxu1  ;;  %v1941_v42 = vpop.f32.mrb[91].mxu0  ;;  %v3108_v49 = vadd.f32 %v3107_v41, %v2823_v29  ;;  %v1950_v56 = vadd.f32 %v4942_v45, %v4132_v38  ;;  %v2699_v3 = vmax.f32 %v1947_v54, 0.0 }
 0x199   : > { %v2453_v44 = vpop.f32.mrb[91].mxu1  ;;  %v2697_v48 = vmax.f32 %v1939_v36, 0.0  ;;  %v1942_v52 = vadd.f32 %v4942_v45, %v1941_v42  ;;  %v2961_v55 = vadd.f32 %v2960_v50, %v2696_v40  ;;  %v2462_v58 = vadd.f32 %v4942_v45, %v4260_v39 }
 0x19a   : > { %v2825_v51 = vmax.f32 %v2451_v37, 0.0  ;;  %v2454_v53 = vadd.f32 %v4942_v45, %v2453_v44  ;;  %v3109_v57 = vadd.f32 %v3108_v49, %v2824_v46  ;;  %v2827_v0 = vmax.f32 %v2459_v47, 0.0 }
 0x19b   : > { %v2698_v59 = vmax.f32 %v1942_v52, 0.0  ;;  %v2962_v61 = vadd.f32 %v2961_v55, %v2697_v48  ;;  %v2700_v9 = vmax.f32 %v1950_v56, 0.0  ;;  %v2828_v10 = vmax.f32 %v2462_v58, 0.0 }
 0x19c   : > { %v2826_v60 = vmax.f32 %v2454_v53, 0.0  ;;  %v3110_v1 = vadd.f32 %v3109_v57, %v2825_v51 }
 0x19d   : > { %v4135_v62 = vpop.f32.mrb[92].mxu0  ;;  %v2963_v4 = vadd.f32 %v2962_v61, %v2698_v59 }
 0x19e   : > { %v4263_v63 = vpop.f32.mrb[92].mxu1  ;;  %v1954_v18 = vpop.f32.mrb[93].mxu0  ;;  %v3111_v11 = vadd.f32 %v3110_v1, %v2826_v60  ;;  %v1963_v15 = vadd.f32 %v4942_v45, %v4135_v62 }
 0x19f   : > { %v2466_v2 = vpop.f32.mrb[93].mxu1  ;;  %v1955_v5 = vadd.f32 %v4942_v45, %v1954_v18  ;;  %v4136_v7 = vpop.f32.mrb[94].mxu0  ;;  %v2964_v14 = vadd.f32 %v2963_v4, %v2699_v3  ;;  %v2475_v16 = vadd.f32 %v4942_v45, %v4263_v63 }
 0x1a0   : > { %v2467_v6 = vadd.f32 %v4942_v45, %v2466_v2  ;;  %v4264_v8 = vpop.f32.mrb[94].mxu1  ;;  %v1957_v12 = vpop.f32.mrb[95].mxu0  ;;  %v3112_v20 = vadd.f32 %v3111_v11, %v2827_v0  ;;  %v1966_v29 = vadd.f32 %v4942_v45, %v4136_v7  ;;  %v2703_v33 = vmax.f32 %v1963_v15, 0.0 }
 0x1a1   : > { %v2469_v13 = vpop.f32.mrb[95].mxu1  ;;  %v2701_v17 = vmax.f32 %v1955_v5, 0.0  ;;  %v1958_v22 = vadd.f32 %v4942_v45, %v1957_v12  ;;  %v2965_v24 = vadd.f32 %v2964_v14, %v2700_v9  ;;  %v2478_v30 = vadd.f32 %v4942_v45, %v4264_v8 }
 0x1a2   : > { %v2829_v21 = vmax.f32 %v2467_v6, 0.0  ;;  %v2470_v23 = vadd.f32 %v4942_v45, %v2469_v13  ;;  %v3113_v25 = vadd.f32 %v3112_v20, %v2828_v10  ;;  %v2831_v35 = vmax.f32 %v2475_v16, 0.0 }
 0x1a3   : > { %v2702_v26 = vmax.f32 %v1958_v22, 0.0  ;;  %v2966_v28 = vadd.f32 %v2965_v24, %v2701_v17  ;;  %v2704_v49 = vmax.f32 %v1966_v29, 0.0  ;;  %v2832_v51 = vmax.f32 %v2478_v30, 0.0 }
 0x1a4   : > { %v2830_v27 = vmax.f32 %v2470_v23, 0.0  ;;  %v3114_v36 = vadd.f32 %v3113_v25, %v2829_v21 }
 0x1a5   : > { %v4139_v31 = vpop.f32.mrb[96].mxu0  ;;  %v2967_v39 = vadd.f32 %v2966_v28, %v2702_v26 }
 0x1a6   : > { %v4267_v32 = vpop.f32.mrb[96].mxu1  ;;  %v1970_v37 = vpop.f32.mrb[97].mxu0  ;;  %v3115_v50 = vadd.f32 %v3114_v36, %v2830_v27  ;;  %v1979_v53 = vadd.f32 %v4942_v45, %v4139_v31 }
 0x1a7   : > { %v2482_v38 = vpop.f32.mrb[97].mxu1  ;;  %v2491_v40 = vadd.f32 %v4942_v45, %v4267_v32  ;;  %v1971_v41 = vadd.f32 %v4942_v45, %v1970_v37  ;;  %v4140_v44 = vpop.f32.mrb[98].mxu0  ;;  %v2968_v52 = vadd.f32 %v2967_v39, %v2703_v33 }
 0x1a8   : > { %v2483_v42 = vadd.f32 %v4942_v45, %v2482_v38  ;;  %v4268_v46 = vpop.f32.mrb[98].mxu1  ;;  %v1973_v47 = vpop.f32.mrb[99].mxu0  ;;  %v3116_v54 = vadd.f32 %v3115_v50, %v2831_v35  ;;  %v1982_v61 = vadd.f32 %v4942_v45, %v4140_v44  ;;  %v2707_v4 = vmax.f32 %v1979_v53, 0.0 }
 0x1a9   : > { %v2485_v48 = vpop.f32.mrb[99].mxu1  ;;  %v1974_v56 = vadd.f32 %v4942_v45, %v1973_v47  ;;  %v2969_v58 = vadd.f32 %v2968_v52, %v2704_v49  ;;  %v2835_v59 = vmax.f32 %v2491_v40, 0.0  ;;  %v2705_v60 = vmax.f32 %v1971_v41, 0.0 }
 0x1aa   : > { %v2833_v55 = vmax.f32 %v2483_v42, 0.0  ;;  %v2486_v57 = vadd.f32 %v4942_v45, %v2485_v48  ;;  %v5029_v62 = vadd.f32 %v3116_v54, %v2832_v51  ;;  %v2494_v63 = vadd.f32 %v4942_v45, %v4268_v46 }
 0x1ab   : > { %v2706_v0 = vmax.f32 %v1974_v56, 0.0  ;;  %v2970_v18 = vrot.slane %v2969_v58, 4  ;;  %v2708_v14 = vmax.f32 %v1982_v61, 0.0 }
 0x1ac   : > { %v2834_v1 = vmax.f32 %v2486_v57, 0.0  ;;  %v2836_v15 = vmax.f32 %v2494_v63, 0.0 }
 0x1ad   : > { %v4143_v2 = vpop.f32.mrb[100].mxu0  ;;  %v2976_v5 = vadd.f32 %v2706_v0, %v2705_v60  ;;  %v2971_v9 = vadd.f32 %v2970_v18, %v2969_v58 }
 0x1ae   : > { %v4271_v3 = vpop.f32.mrb[100].mxu1  ;;  %v3124_v6 = vadd.f32 %v2834_v1, %v2833_v55  ;;  %v1986_v7 = vpop.f32.mrb[101].mxu0  ;;  %v1995_v26 = vadd.f32 %v4942_v45, %v4143_v2 }
 0x1af   : > { %v2498_v8 = vpop.f32.mrb[101].mxu1  ;;  %v1987_v10 = vadd.f32 %v4942_v45, %v1986_v7  ;;  %v4144_v12 = vpop.f32.mrb[102].mxu0  ;;  %v2977_v16 = vadd.f32 %v2976_v5, %v2707_v4  ;;  %v2972_v22 = vrot.slane %v2971_v9, 2  ;;  %v2507_v23 = vadd.f32 %v4942_v45, %v4271_v3 }
 0x1b0   : > { %v2499_v11 = vadd.f32 %v4942_v45, %v2498_v8  ;;  %v4272_v13 = vpop.f32.mrb[102].mxu1  ;;  %v3125_v17 = vadd.f32 %v3124_v6, %v2835_v59  ;;  %v1989_v20 = vpop.f32.mrb[103].mxu0  ;;  %v1998_v35 = vadd.f32 %v4942_v45, %v4144_v12  ;;  %v2711_v44 = vmax.f32 %v1995_v26, 0.0 }
 0x1b1   : > { %v2501_v21 = vpop.f32.mrb[103].mxu1  ;;  %v2709_v24 = vmax.f32 %v1987_v10, 0.0  ;;  %v2978_v27 = vadd.f32 %v2977_v16, %v2708_v14  ;;  %v2973_v29 = vadd.f32 %v2972_v22, %v2971_v9  ;;  %v1990_v30 = vadd.f32 %v4942_v45, %v1989_v20 }
 0x1b2   : > { %v2837_v25 = vmax.f32 %v2499_v11, 0.0  ;;  %v3126_v28 = vadd.f32 %v3125_v17, %v2836_v15  ;;  %v2502_v31 = vadd.f32 %v4942_v45, %v2501_v21  ;;  %v2510_v36 = vadd.f32 %v4942_v45, %v4272_v13 }
 0x1b3   : > { %v2979_v32 = vadd.f32 %v2978_v27, %v2709_v24  ;;  %v2974_v37 = vrot.slane %v2973_v29, 1  ;;  %v2839_v38 = vmax.f32 %v2507_v23, 0.0  ;;  %v2710_v39 = vmax.f32 %v1990_v30, 0.0 }
 0x1b4   : > { %v3127_v33 = vadd.f32 %v3126_v28, %v2837_v25  ;;  %v2838_v40 = vmax.f32 %v2502_v31, 0.0  ;;  %v2712_v54 = vmax.f32 %v1998_v35, 0.0  ;;  %v2840_v55 = vmax.f32 %v2510_v36, 0.0 }
 0x1b5   : > { %v4147_v41 = vpop.f32.mrb[104].mxu0  ;;  %v2975_v47 = vadd.f32 %v2974_v37, %v2973_v29  ;;  %v2980_v48 = vadd.f32 %v2979_v32, %v2710_v39 }
 0x1b6   : > { %v4275_v42 = vpop.f32.mrb[104].mxu1  ;;  %v2002_v46 = vpop.f32.mrb[105].mxu0  ;;  %v3128_v49 = vadd.f32 %v3127_v33, %v2838_v40  ;;  %v2011_v0 = vadd.f32 %v4942_v45, %v4147_v41 }
 0x1b7   : > { %v2514_v50 = vpop.f32.mrb[105].mxu1  ;;  %v2003_v51 = vadd.f32 %v4942_v45, %v2002_v46  ;;  %v4148_v52 = vpop.f32.mrb[106].mxu0  ;;  %v3164_v59 = vmul.f32 0.00390625, %v2975_v47  ;;  %v2981_v60 = vadd.f32 %v2980_v48, %v2711_v44  ;;  %v2523_v1 = vadd.f32 %v4942_v45, %v4275_v42 }
 0x1b8   : > { %v4276_v53 = vpop.f32.mrb[106].mxu1  ;;  %v2515_v56 = vadd.f32 %v4942_v45, %v2514_v50  ;;  %v2005_v57 = vpop.f32.mrb[107].mxu0  ;;  %v3129_v61 = vadd.f32 %v3128_v49, %v2839_v38  ;;  %v2014_v6 = vadd.f32 %v4942_v45, %v4148_v52  ;;  %v2715_v17 = vmax.f32 %v2011_v0, 0.0 }
 0x1b9   : > { %v2517_v58 = vpop.f32.mrb[107].mxu1  ;;  %v2713_v63 = vmax.f32 %v2003_v51, 0.0  ;;  %v5046_v2 = vsel %vm3181_vm3, %v3164_v59, %v4976_v43  ;;  %v2982_v3 = vadd.f32 %v2981_v60, %v2712_v54  ;;  %v2006_v5 = vadd.f32 %v4942_v45, %v2005_v57 }
 0x1ba   : > { %v2841_v18 = vmax.f32 %v2515_v56, 0.0  ;;  %v3130_v4 = vadd.f32 %v3129_v61, %v2840_v55  ;;  %v2518_v7 = vadd.f32 %v4942_v45, %v2517_v58  ;;  %v2526_v10 = vadd.f32 %v4942_v45, %v4276_v53 }
 0x1bb   : > { %v2983_v8 = vadd.f32 %v2982_v3, %v2713_v63  ;;  %v2714_v11 = vmax.f32 %v2006_v5, 0.0  ;;  %v2843_v14 = vmax.f32 %v2523_v1, 0.0  ;;  %v2716_v25 = vmax.f32 %v2014_v6, 0.0 }
 0x1bc   : > { %v3131_v9 = vadd.f32 %v3130_v4, %v2841_v18  ;;  %v2842_v15 = vmax.f32 %v2518_v7, 0.0  ;;  %v2844_v29 = vmax.f32 %v2526_v10, 0.0 }
 0x1bd   : > { %v4151_v12 = vpop.f32.mrb[108].mxu0  ;;  %v2984_v20 = vadd.f32 %v2983_v8, %v2714_v11 }
 0x1be   : > { %v4279_v13 = vpop.f32.mrb[108].mxu1  ;;  %v2018_v16 = vpop.f32.mrb[109].mxu0  ;;  %v3132_v26 = vadd.f32 %v3131_v9, %v2842_v15  ;;  %v2027_v38 = vadd.f32 %v4942_v45, %v4151_v12 }
 0x1bf   : > { %v2530_v43 = vpop.f32.mrb[109].mxu1  ;;  %v2019_v21 = vadd.f32 %v4942_v45, %v2018_v16  ;;  %v4152_v23 = vpop.f32.mrb[110].mxu0  ;;  %v2985_v30 = vadd.f32 %v2984_v20, %v2715_v17  ;;  %v2539_v31 = vadd.f32 %v4942_v45, %v4279_v13 }
 0x1c0   : > { %v2531_v22 = vadd.f32 %v4942_v45, %v2530_v43  ;;  %v4280_v24 = vpop.f32.mrb[110].mxu1  ;;  %v2021_v27 = vpop.f32.mrb[111].mxu0  ;;  %v3133_v33 = vadd.f32 %v3132_v26, %v2843_v14  ;;  %v2030_v41 = vadd.f32 %v4942_v45, %v4152_v23  ;;  %v2719_v54 = vmax.f32 %v2027_v38, 0.0 }
 0x1c1   : > { %v2533_v28 = vpop.f32.mrb[111].mxu1  ;;  %v2717_v32 = vmax.f32 %v2019_v21, 0.0  ;;  %v2022_v36 = vadd.f32 %v4942_v45, %v2021_v27  ;;  %v2986_v39 = vadd.f32 %v2985_v30, %v2716_v25  ;;  %v2542_v50 = vadd.f32 %v4942_v45, %v4280_v24 }
 0x1c2   : > { %v2845_v35 = vmax.f32 %v2531_v22, 0.0  ;;  %v2534_v37 = vadd.f32 %v4942_v45, %v2533_v28  ;;  %v3134_v40 = vadd.f32 %v3133_v33, %v2844_v29  ;;  %v2847_v49 = vmax.f32 %v2539_v31, 0.0 }
 0x1c3   : > { %v2718_v42 = vmax.f32 %v2022_v36, 0.0  ;;  %v2987_v46 = vadd.f32 %v2986_v39, %v2717_v32  ;;  %v2720_v60 = vmax.f32 %v2030_v41, 0.0  ;;  %v2848_v1 = vmax.f32 %v2542_v50, 0.0 }
 0x1c4   : > { %v2846_v44 = vmax.f32 %v2534_v37, 0.0  ;;  %v3135_v51 = vadd.f32 %v3134_v40, %v2845_v35 }
 0x1c5   : > { %v4155_v47 = vpop.f32.mrb[112].mxu0  ;;  %v2988_v55 = vadd.f32 %v2987_v46, %v2718_v42 }
 0x1c6   : > { %v4283_v48 = vpop.f32.mrb[112].mxu1  ;;  %v2034_v52 = vpop.f32.mrb[113].mxu0  ;;  %v3136_v61 = vadd.f32 %v3135_v51, %v2846_v44  ;;  %v2043_v9 = vadd.f32 %v4942_v45, %v4155_v47 }
 0x1c7   : > { %v2546_v53 = vpop.f32.mrb[113].mxu1  ;;  %v2035_v56 = vadd.f32 %v4942_v45, %v2034_v52  ;;  %v4156_v58 = vpop.f32.mrb[114].mxu0  ;;  %v2989_v18 = vadd.f32 %v2988_v55, %v2719_v54  ;;  %v2555_v3 = vadd.f32 %v4942_v45, %v4283_v48 }
 0x1c8   : > { %v2547_v57 = vadd.f32 %v4942_v45, %v2546_v53  ;;  %v4284_v59 = vpop.f32.mrb[114].mxu1  ;;  %v2037_v63 = vpop.f32.mrb[115].mxu0  ;;  %v3137_v5 = vadd.f32 %v3136_v61, %v2847_v49  ;;  %v2046_v15 = vadd.f32 %v4942_v45, %v4156_v58  ;;  %v2723_v23 = vmax.f32 %v2043_v9, 0.0 }
 0x1c9   : > { %v2549_v0 = vpop.f32.mrb[115].mxu1  ;;  %v2721_v4 = vmax.f32 %v2035_v56, 0.0  ;;  %v2038_v7 = vadd.f32 %v4942_v45, %v2037_v63  ;;  %v2990_v10 = vadd.f32 %v2989_v18, %v2720_v60  ;;  %v2558_v16 = vadd.f32 %v4942_v45, %v4284_v59 }
 0x1ca   : > { %v2849_v6 = vmax.f32 %v2547_v57, 0.0  ;;  %v2550_v8 = vadd.f32 %v4942_v45, %v2549_v0  ;;  %v3138_v11 = vadd.f32 %v3137_v5, %v2848_v1  ;;  %v2851_v17 = vmax.f32 %v2555_v3, 0.0 }
 0x1cb   : > { %v2722_v12 = vmax.f32 %v2038_v7, 0.0  ;;  %v2991_v14 = vadd.f32 %v2990_v10, %v2721_v4  ;;  %v2724_v32 = vmax.f32 %v2046_v15, 0.0  ;;  %v2852_v33 = vmax.f32 %v2558_v16, 0.0 }
 0x1cc   : > { %v2850_v13 = vmax.f32 %v2550_v8, 0.0  ;;  %v3139_v20 = vadd.f32 %v3138_v11, %v2849_v6 }
 0x1cd   : > { %v4159_v43 = vpop.f32.mrb[116].mxu0  ;;  %v2992_v24 = vadd.f32 %v2991_v14, %v2722_v12  ;;  %v4473_v12 = vld [vmem:[%s5159_s2] ss:$0 sm:$0xff] }
 0x1ce   : > { %v4287_v21 = vpop.f32.mrb[116].mxu1  ;;  %v2050_v22 = vpop.f32.mrb[117].mxu0  ;;  %v3140_v28 = vadd.f32 %v3139_v20, %v2850_v13  ;;  %v2059_v42 = vadd.f32 %v4942_v45, %v4159_v43 }
 0x1cf   : > { %v2051_v25 = vadd.f32 %v4942_v45, %v2050_v22  ;;  %v2562_v26 = vpop.f32.mrb[117].mxu1  ;;  %v4160_v27 = vpop.f32.mrb[118].mxu0  ;;  %v2993_v35 = vadd.f32 %v2992_v24, %v2723_v23  ;;  %v2571_v39 = vadd.f32 %v4942_v45, %v4287_v21 }
 0x1d0   : > { %v2563_v29 = vadd.f32 %v4942_v45, %v2562_v26  ;;  %v4288_v30 = vpop.f32.mrb[118].mxu1  ;;  %v2053_v31 = vpop.f32.mrb[119].mxu0  ;;  %v3141_v38 = vadd.f32 %v3140_v28, %v2851_v17  ;;  %v2062_v49 = vadd.f32 %v4942_v45, %v4160_v27  ;;  %v2727_v58 = vmax.f32 %v2059_v42, 0.0 }
 0x1d1   : > { %v2725_v36 = vmax.f32 %v2051_v25, 0.0  ;;  %v2565_v37 = vpop.f32.mrb[119].mxu1  ;;  %v2054_v41 = vadd.f32 %v4942_v45, %v2053_v31  ;;  %v2994_v44 = vadd.f32 %v2993_v35, %v2724_v32  ;;  %v2574_v51 = vadd.f32 %v4942_v45, %v4288_v30 }
 0x1d2   : > { %v2853_v40 = vmax.f32 %v2563_v29, 0.0  ;;  %v2566_v46 = vadd.f32 %v4942_v45, %v2565_v37  ;;  %v3142_v50 = vadd.f32 %v3141_v38, %v2852_v33  ;;  %v2855_v54 = vmax.f32 %v2571_v39, 0.0 }
 0x1d3   : > { %v2726_v47 = vmax.f32 %v2054_v41, 0.0  ;;  %v2995_v48 = vadd.f32 %v2994_v44, %v2725_v36  ;;  %v2728_v4 = vmax.f32 %v2062_v49, 0.0  ;;  %v2856_v5 = vmax.f32 %v2574_v51, 0.0 }
 0x1d4   : > { %v2854_v52 = vmax.f32 %v2566_v46, 0.0  ;;  %v3143_v55 = vadd.f32 %v3142_v50, %v2853_v40  ;;  %v3044_v33 = vrot.slane %v4884_v19, 4  ;;  %v3081_v49 = vrot.slane %v4959_v34, 4 }
 0x1d5   : > { %v4163_v53 = vpop.f32.mrb[120].mxu0  ;;  %v2996_v59 = vadd.f32 %v2995_v48, %v2726_v47 }
 0x1d6   : > { %v4291_v56 = vpop.f32.mrb[120].mxu1  ;;  %v2066_v57 = vpop.f32.mrb[121].mxu0  ;;  %v3144_v0 = vadd.f32 %v3143_v55, %v2854_v52  ;;  %v2075_v14 = vadd.f32 %v4473_v12, %v4163_v53 }
 0x1d7   : > { %v2067_v60 = vadd.f32 %v4942_v45, %v2066_v57  ;;  %v2578_v61 = vpop.f32.mrb[121].mxu1  ;;  %v4164_v63 = vpop.f32.mrb[122].mxu0  ;;  %v2997_v6 = vadd.f32 %v2996_v59, %v2727_v58  ;;  %v2587_v10 = vadd.f32 %v4942_v45, %v4291_v56 }
 0x1d8   : > { %v2579_v1 = vadd.f32 %v4942_v45, %v2578_v61  ;;  %v4292_v18 = vpop.f32.mrb[122].mxu1  ;;  %v2069_v3 = vpop.f32.mrb[123].mxu0  ;;  %v3145_v9 = vadd.f32 %v3144_v0, %v2855_v54  ;;  %v2078_v21 = vadd.f32 %v4473_v12, %v4164_v63  ;;  %v2731_v28 = vmax.f32 %v2075_v14, 0.0 }
 0x1d9   : > { %v2729_v7 = vmax.f32 %v2067_v60, 0.0  ;;  %v2581_v8 = vpop.f32.mrb[123].mxu1  ;;  %v2070_v13 = vadd.f32 %v4473_v12, %v2069_v3  ;;  %v2998_v15 = vadd.f32 %v2997_v6, %v2728_v4  ;;  %v2590_v22 = vadd.f32 %v4473_v12, %v4292_v18 }
 0x1da   : > { %v2857_v11 = vmax.f32 %v2579_v1, 0.0  ;;  %v2582_v16 = vadd.f32 %v4473_v12, %v2581_v8  ;;  %v3146_v43 = vadd.f32 %v3145_v9, %v2856_v5  ;;  %v2859_v25 = vmax.f32 %v2587_v10, 0.0 }
 0x1db   : > { %v2730_v17 = vmax.f32 %v2070_v13, 0.0  ;;  %v2999_v20 = vadd.f32 %v2998_v15, %v2729_v7  ;;  %v2732_v39 = vmax.f32 %v2078_v21, 0.0  ;;  %v2860_v40 = vmax.f32 %v2590_v22, 0.0 }
 0x1dc   : > { %v2858_v23 = vmax.f32 %v2582_v16, 0.0  ;;  %v3147_v26 = vadd.f32 %v3146_v43, %v2857_v11  ;;  %v3118_v54 = vrot.slane %v5029_v62, 4  ;;  %v3045_v60 = vadd.f32 %v3044_v33, %v4884_v19 }
 0x1dd   : > { %v4167_v24 = vpop.f32.mrb[124].mxu0  ;;  %v3000_v29 = vadd.f32 %v2999_v20, %v2730_v17  ;;  %v3082_v1 = vadd.f32 %v3081_v49, %v4959_v34  ;;  %v4478_v49 = vld [vmem:[%s5160_s3 + $0x20] sm:$0xff] (!%p3880_p4)  }
 0x1de   : > { %v4295_v27 = vpop.f32.mrb[124].mxu1  ;;  %v2082_v45 = vpop.f32.mrb[125].mxu0  ;;  %v3148_v35 = vadd.f32 %v3147_v26, %v2858_v23  ;;  %v2091_v51 = vadd.f32 %v4473_v12, %v4167_v24  ;;  %v3119_v4 = vadd.f32 %v3118_v54, %v5029_v62  ;;  %v3046_v8 = vrot.slane %v3045_v60, 2 }
 0x1df   : > { %v2083_v30 = vadd.f32 %v4473_v12, %v2082_v45  ;;  %v2594_v31 = vpop.f32.mrb[125].mxu1  ;;  %v4168_v32 = vpop.f32.mrb[126].mxu0  ;;  %v3001_v41 = vadd.f32 %v3000_v29, %v2731_v28  ;;  %v2603_v50 = vadd.f32 %v4473_v12, %v4295_v27  ;;  %v3083_v11 = vrot.slane %v3082_v1, 2 }
 0x1e0   : > { %v2595_v36 = vadd.f32 %v4473_v12, %v2594_v31  ;;  %v4296_v37 = vpop.f32.mrb[126].mxu1  ;;  %v2085_v38 = vpop.f32.mrb[127].mxu0  ;;  %v3149_v46 = vadd.f32 %v3148_v35, %v2859_v25  ;;  %v2094_v58 = vadd.f32 %v4473_v12, %v4168_v32  ;;  %v2735_v18 = vmax.f32 %v2091_v51, 0.0  ;;  %v4479_v51 = vld [vmem:[%s5160_s3 + $0x28] sm:$0xff] (!%p3880_p4)  }
 0x1e1   : > { %v2733_v42 = vmax.f32 %v2083_v30, 0.0  ;;  %v2597_v44 = vpop.f32.mrb[127].mxu1  ;;  %v2086_v48 = vadd.f32 %v4473_v12, %v2085_v38  ;;  %v3002_v52 = vadd.f32 %v3001_v41, %v2732_v39  ;;  %v2863_v61 = vmax.f32 %v2603_v50, 0.0  ;;  %v4475_v50 = vld [vmem:[%s5160_s3 + $0x8] sm:$0xff] (!%p3880_p4)  }
 0x1e2   : > { %v2861_v47 = vmax.f32 %v2595_v36, 0.0  ;;  %v2598_v53 = vadd.f32 %v4473_v12, %v2597_v44  ;;  %v3150_v55 = vadd.f32 %v3149_v46, %v2860_v40  ;;  %v2606_v0 = vadd.f32 %v4473_v12, %v4296_v37 }
 0x1e3   : > { %v2734_v56 = vmax.f32 %v2086_v48, 0.0  ;;  %v3003_v57 = vadd.f32 %v3002_v52, %v2733_v42  ;;  %v2736_v6 = vmax.f32 %v2094_v58, 0.0  ;;  %v3120_v14 = vrot.slane %v3119_v4, 2  ;;  %v4477_v48 = vld [vmem:[%s5160_s3 + $0x18] sm:$0xff] (!%p3880_p4)   ;;  %v4480_v52 = vld [vmem:[%s5160_s3 + $0x30] sm:$0xff] (!%p3880_p4)  }
 0x1e4   : > { %v2862_v59 = vmax.f32 %v2598_v53, 0.0  ;;  %v3151_v63 = vadd.f32 %v3150_v55, %v2861_v47  ;;  %v2864_v9 = vmax.f32 %v2606_v0, 0.0  ;;  %v3047_v16 = vadd.f32 %v3046_v8, %v3045_v60  ;;  %v4476_v47 = vld [vmem:[%s5160_s3 + $0x10] sm:$0xff] (!%p3880_p4)   ;;  %v4481_v53 = vld [vmem:[%s5160_s3 + $0x38] sm:$0xff] (!%p3880_p4)  }
 0x1e5   : > { %v3004_v3 = vadd.f32 %v3003_v57, %v2734_v56  ;;  %v3084_v12 = vadd.f32 %v3083_v11, %v3082_v1  ;;  %v3121_v34 = vadd.f32 %v3120_v14, %v3119_v4  ;;  %v4490_v46 = vmov (!%p3880_p4), 0.0  }
 0x1e6   : > { %v3152_v5 = vadd.f32 %v3151_v63, %v2862_v59  ;;  %v3048_v22 = vrot.slane %v3047_v16, 1  ;;  %4297 = vmatprep.subr.bf16.mxu0 (!%p3880_p4), %v4490_v46  ;;  %4317 = vmatprep.subr.mxu1 (!%p3880_p4), %v4490_v46  ;;  %v3397_v57 = vlaneseq (!%p3880_p4) }
 0x1e7   : > { %v3005_v7 = vadd.f32 %v3004_v3, %v2735_v18  ;;  %v3085_v23 = vrot.slane %v3084_v12, 1  ;;  %v3122_v25 = vrot.slane %v3121_v34, 1  ;;  %4313 = vmatprep.mubr.msk.bf16.mxu0 (!%p3880_p4), %vm4491_vm9, %v4490_v46  ;;  %4319 = vmatprep.mubr.msk.f32.mxu1 (!%p3880_p4), %vm4491_vm9, %v4490_v46 }
 0x1e8   : > { %v3153_v10 = vadd.f32 %v3152_v5, %v2863_v61  ;;  %v3049_v45 = vadd.f32 %v3048_v22, %v3047_v16  ;;  %v3398_v58 = vshrl.u32 (!%p3880_p4), %v3397_v57, 7  ;;  %v3540_v59 = vand.u32 (!%p3880_p4), 127, %v3397_v57  ;;  %v3881_v61 = vld [vmem:[%s5161_s4] ss:$0 sm:$0xff] (!%p3880_p4) }
 0x1e9   : > { %v3006_v13 = vadd.f32 %v3005_v7, %v2736_v6  ;;  %v3086_v29 = vadd.f32 %v3085_v23, %v3084_v12  ;;  %v3123_v31 = vadd.f32 %v3122_v25, %v3121_v34  ;;  %v3317_v6 = vld [vmem:[%s5162_s5] sm:$0xf] (!%p3880_p4)  ;;  %v4492_v7 = vmov (!%p3880_p4), 1966171168  }
 0x1ea   : > { %v3154_v15 = vadd.f32 %v3153_v10, %v2864_v9  ;;  %v3166_v35 = vmul.f32 0.00390625, %v3049_v45  ;;  %v5120_v60 = vsub.s32 (!%p3880_p4), %v3540_v59, %v3398_v58  ;;  %v3395_v8 = vunpack.c.l.s4 (!%p3880_p4), %v4492_v7 }
 0x1eb   : > { %v3007_v19 = vrot.slane %v3006_v13, 4  ;;  %v3167_v36 = vmul.f32 0.00390625, %v3086_v29  ;;  %v3168_v38 = vmul.f32 0.00390625, %v3123_v31 }
 0x1ec   : > { %v3155_v43 = vrot.slane %v3154_v15, 4  ;;  %v3396_v9 = vunpack.c.0.s8 (!%p3880_p4), %v3395_v8 }
 0x1ed   : > { %v3008_v17 = vadd.f32 %v3007_v19, %v3006_v13 }
 0x1ee   : > { %v3156_v20 = vadd.f32 %v3155_v43, %v3154_v15  ;;  %v3399_v11 = vsub.s32 (!%p3880_p4), %v3396_v9, %v3398_v58 }
 0x1ef   : > { %v3009_v21 = vrot.slane %v3008_v17, 2 }
 0x1f0   : > { %v3157_v62 = vrot.slane %v3156_v20, 2 }
 0x1f1   : > { %v3010_v24 = vadd.f32 %v3009_v21, %v3008_v17 }
 0x1f2   : > { %v3158_v26 = vadd.f32 %v3157_v62, %v3156_v20  ;;  %v3444_v20 = vsub.s32 (!%p3880_p4), 0, %v3398_v58 }
 0x1f3   : > { %v3011_v27 = vrot.slane %v3010_v24, 1 }
 0x1f4   : > { %v3159_v28 = vrot.slane %v3158_v26, 1 }
 0x1f5   : > { %v3012_v30 = vadd.f32 %v3011_v27, %v3010_v24 }
 0x1f6   : > { %v3160_v33 = vadd.f32 %v3159_v28, %v3158_v26 }
 0x1f7   : > { %v3165_v32 = vmul.f32 0.00390625, %v3012_v30 }
 0x1f8   : > { %v3169_v40 = vmul.f32 0.00390625, %v3160_v33  ;;  %3199 = sbr.rel (%p3880_p4) target bundleno = 1132 (0x46c), region = 48 }
 0x1f9   : > { %v3184_v37 = vsel %vm3183_vm4, %v3165_v32, %v5046_v2  ;;  %v4474_v2 = vld [vmem:[%s5160_s3] sm:$0xff] (!%p3880_p4)  }
 0x1fa   : > { %v3186_v39 = vsel %vm3185_vm5, %v3166_v35, %v3184_v37  ;;  %4298 = vmatpush3.bf16.msra.mxu0 (!%p3880_p4), %v4474_v2 }
 0x1fb   : > { %v3188_v41 = vsel %vm3187_vm6, %v3167_v36, %v3186_v39  ;;  %4299 = vmatprep.subr.bf16.mxu0 (!%p3880_p4), %v4490_v46 }
 0x1fc   : > { %v3190_v42 = vsel %vm3189_vm7, %v3168_v38, %v3188_v41 }
 0x1fd   : > { %v3192_v44 = vsel %vm3191_vm8, %v3169_v40, %v3190_v42 }
 0x1fe   : > { %3195 = vst [vmem:[%s3194_s17] sm:$0xff] %v3192_v44  ;;  %4300 = vmatpush3.bf16.msra.mxu0 (!%p3880_p4), %v4475_v50 }
 0x1ff   : > { %4301 = vmatprep.subr.bf16.mxu0 %v4490_v46 }
 0x202   : > { %4302 = vmatpush3.bf16.msra.mxu0 %v4476_v47 }
 0x203   : > { %4303 = vmatprep.subr.bf16.mxu0 %v4490_v46 }
 0x205   : > { %v3200_v54 = vld [vmem:[#allocation2] sm:$0xff]  ;;  %v3201_v55 = vld [vmem:[#allocation2 + $0x8] sm:$0xff] }
 0x206   : > { %4304 = vmatpush3.bf16.msra.mxu0 %v4477_v48  ;;  %v3202_v56 = vpack.c.bf16 %v3201_v55, %v3200_v54 }
 0x207   : > { %4305 = vmatprep.subr.bf16.mxu0 %v4490_v46 }
 0x20a   : > { %4306 = vmatpush3.bf16.msra.mxu0 %v4478_v49 }
 0x20b   : > { %4307 = vmatprep.subr.bf16.mxu0 %v4490_v46 }
 0x20e   : > { %4308 = vmatpush3.bf16.msra.mxu0 %v4479_v51 }
 0x20f   : > { %4309 = vmatprep.subr.bf16.mxu0 %v4490_v46 }
 0x212   : > { %4310 = vmatpush3.bf16.msra.mxu0 %v4480_v52 }
 0x213   : > { %4311 = vmatprep.subr.bf16.mxu0 %v4490_v46 }
 0x216   : > { %4312 = vmatpush3.bf16.msra.mxu0 %v4481_v53 }
 0x219   : > { %4314 = vmatmul.mubr.bf16.vlgmr.msra.gmra.mrb[0].mxu0 %v3202_v56 }
 0x2ec   : > { %v3308_v63 = vpop.f32.mrb[0].mxu0 }
 0x2ed   : > { %v3309_v0 = vadd.f32 %v3881_v61, %v3308_v63  ;;  %v4315_v1 = vpop.f32.mrb[1].mxu0 }
 0x2ee   : > { %v3311_v18 = vpop.f32.mrb[2].mxu0 }
 0x2ef   : > { %v3312_v3 = vadd.f32 %v3881_v61, %v3311_v18  ;;  %v4316_v4 = vpop.f32.mrb[3].mxu0  ;;  %v3315_v5 = vadd.f32 %v3309_v0, %v3200_v54 }
 0x2f1   : > { %4318 = vmatpush3.msra.mxu1 %v3315_v5  ;;  %v3316_v10 = vadd.f32 %v3312_v3, %v3201_v55 }
 0x2f2   : > { %4320 = vmatmul.mubr.msk.f32.vlgmr.msra.gmra.mrb[0].mxu1 %vm3318_vm10, %v3317_v6 }
 0x2f3   : > { %v3393_v13 = vcombine.high %v3316_v10, %v3316_v10  ;;  %v3400_v14 = vrot.slane %v3316_v10, %v3399_v11 }
 0x2f5   : > { %v3407_v15 = vrot.slane %v3393_v13, %v3399_v11  ;;  %v3408_v19 = vcombine.high %v3400_v14, %v3400_v14  ;;  %v3416_v43 = vrot.slane %v3400_v14, %v3399_v11 }
 0x2f7   : > { %v3409_v16 = vcombine.high %v3407_v15, %v3407_v15  ;;  %v3430_v12 = vrot.slane %v3408_v19, %v3399_v11  ;;  %v3423_v17 = vrot.slane %v3407_v15, %v3399_v11  ;;  %v3438_v21 = vcombine.high %v3416_v43, %v3416_v43 }
 0x2f8   : > { %v3445_v24 = vrot.slane %v3416_v43, %v3444_v20 }
 0x2f9   : > { %v3437_v34 = vrot.slane %v3409_v16, %v3399_v11  ;;  %v3440_v22 = vcombine.high %v3430_v12, %v3430_v12  ;;  %v3439_v62 = vcombine.high %v3423_v17, %v3423_v17  ;;  %v3453_v25 = vrot.slane %v3438_v21, %v3444_v20 }
 0x2fa   : > { %v3449_v26 = vrot.slane %v3430_v12, %v3444_v20  ;;  %v3461_v45 = vrot.slane %v3423_v17, %v3444_v20 }
 0x2fb   : > { %v3441_v23 = vcombine.high %v3437_v34, %v3437_v34  ;;  %v3457_v27 = vrot.slane %v3440_v22, %v3444_v20  ;;  %v3465_v29 = vrot.slane %v3437_v34, %v3444_v20  ;;  %v3469_v30 = vrot.slane %v3439_v62, %v3444_v20 }
 0x2fd   : > { %v3473_v31 = vrot.slane %v3441_v23, %v3444_v20 }
 0x3c5   : > { %v3388_v28 = vpop.f32.mrb[0].mxu1 }
 0x3c6   : > { %v4321_v32 = vpop.f32.mrb[1].mxu1  ;;  %v3482_v33 = vsub.f32 %v3445_v24, %v3388_v28  ;;  %v3484_v35 = vsub.f32 %v3453_v25, %v3388_v28  ;;  %v3483_v36 = vsub.f32 %v3449_v26, %v3388_v28  ;;  %v3485_v37 = vsub.f32 %v3457_v27, %v3388_v28 }
 0x3c7   : > { %v3486_v38 = vsub.f32 %v3461_v45, %v3388_v28  ;;  %v3487_v39 = vsub.f32 %v3465_v29, %v3388_v28  ;;  %v3488_v40 = vsub.f32 %v3469_v30, %v3388_v28  ;;  %v3489_v41 = vsub.f32 %v3473_v31, %v3388_v28 }
 0x3c8   : > { %v3490_v42 = vmul.f32 %v3482_v33, %v3482_v33  ;;  %v3492_v44 = vmul.f32 %v3484_v35, %v3484_v35  ;;  %v3491_v50 = vmul.f32 %v3483_v36, %v3483_v36  ;;  %v3493_v47 = vmul.f32 %v3485_v37, %v3485_v37 }
 0x3c9   : > { %v3494_v51 = vmul.f32 %v3486_v38, %v3486_v38  ;;  %v3495_v52 = vmul.f32 %v3487_v39, %v3487_v39  ;;  %v3496_v55 = vmul.f32 %v3488_v40, %v3488_v40  ;;  %v3497_v56 = vmul.f32 %v3489_v41, %v3489_v41 }
 0x3ca   : > { %v3499_v2 = vsel %vm3498_vm11, %v3490_v42, 0.0  ;;  %v3505_v46 = vsel %vm3498_vm11, %v3492_v44, 0.0  ;;  %v3502_v48 = vsel %vm3498_vm11, %v3491_v50, 0.0  ;;  %v3508_v49 = vsel %vm3498_vm11, %v3493_v47, 0.0 }
 0x3cb   : > { %3500 = vadd.xlane.f32.xlu0 %v3499_v2  ;;  %3506 = vadd.xlane.f32.xlu1 %v3505_v46  ;;  %v3511_v53 = vsel %vm3498_vm11, %v3494_v51, 0.0  ;;  %v3514_v54 = vsel %vm3498_vm11, %v3495_v52, 0.0  ;;  %v3517_v57 = vsel %vm3498_vm11, %v3496_v55, 0.0  ;;  %v3520_v58 = vsel %vm3498_vm11, %v3497_v56, 0.0 }
 0x3cf   : > { %3503 = vadd.xlane.f32.xlu0 %v3502_v48  ;;  %3509 = vadd.xlane.f32.xlu1 %v3508_v49 }
 0x3d3   : > { %3512 = vadd.xlane.f32.xlu0 %v3511_v53  ;;  %3515 = vadd.xlane.f32.xlu1 %v3514_v54 }
 0x3d7   : > { %3518 = vadd.xlane.f32.xlu0 %v3517_v57  ;;  %3521 = vadd.xlane.f32.xlu1 %v3520_v58 }
 0x458   : > { %v3501_v59 = vpop.xlane.xlu0 %3500  ;;  %v3507_v61 = vpop.xlane.xlu1 %3506 }
 0x459   : > { %v3523_v63 = vsub.f32 0.0, %v3501_v59  ;;  %v3525_v0 = vsub.f32 0.0, %v3507_v61 }
 0x45b   : > { %v3544_v5 = vrot.slane %v3523_v63, %v5120_v60  ;;  %v3552_v7 = vrot.slane %v3525_v0, %v5120_v60 }
 0x45c   : > { %v3504_v1 = vpop.xlane.xlu0 %3503  ;;  %v3510_v18 = vpop.xlane.xlu1 %3509 }
 0x45d   : > { %v3524_v3 = vsub.f32 0.0, %v3504_v1  ;;  %v3526_v4 = vsub.f32 0.0, %v3510_v18 }
 0x45f   : > { %v3548_v6 = vrot.slane %v3524_v3, %v5120_v60  ;;  %v3556_v11 = vrot.slane %v3526_v4, %v5120_v60 }
 0x460   : > { %v3513_v8 = vpop.xlane.xlu0 %3512  ;;  %v3516_v9 = vpop.xlane.xlu1 %3515 }
 0x461   : > { %v3573_v10 = vsel %vm3179_vm2, %v3548_v6, %v3544_v5  ;;  %v3527_v13 = vsub.f32 0.0, %v3513_v8  ;;  %v3528_v14 = vsub.f32 0.0, %v3516_v9 }
 0x462   : > { %v3574_v15 = vsel %vm3181_vm3, %v3552_v7, %v3573_v10 }
 0x463   : > { %v3575_v19 = vsel %vm3183_vm4, %v3556_v11, %v3574_v15  ;;  %v3560_v16 = vrot.slane %v3527_v13, %v5120_v60  ;;  %v3564_v43 = vrot.slane %v3528_v14, %v5120_v60 }
 0x464   : > { %v3519_v12 = vpop.xlane.xlu0 %3518  ;;  %v3522_v17 = vpop.xlane.xlu1 %3521 }
 0x465   : > { %v3576_v34 = vsel %vm3185_vm5, %v3560_v16, %v3575_v19  ;;  %v3529_v20 = vsub.f32 0.0, %v3519_v12  ;;  %v3530_v21 = vsub.f32 0.0, %v3522_v17 }
 0x466   : > { %v3577_v23 = vsel %vm3187_vm6, %v3564_v43, %v3576_v34 }
 0x467   : > { %v3568_v22 = vrot.slane %v3529_v20, %v5120_v60  ;;  %v3572_v62 = vrot.slane %v3530_v21, %v5120_v60 }
 0x469   : > { %v3578_v24 = vsel %vm3189_vm7, %v3568_v22, %v3577_v23 }
 0x46a   : > { %v3579_v25 = vsel %vm3191_vm8, %v3572_v62, %v3578_v24 }
 0x46b   : > { %3582 = vst.msk [vmem:[%s5163_s6] sm:$0xff] %vm3581_vm12, %v3579_v25 }
 0x46c PF: > { %s16_s21 = sadd.s32 1, %s4488_s21  }
 0x46d   : > { %p13_p5 = scmp.ge.s32.totalorder %s16_s21, 4  }
 0x46f   :  { %15 = sbr.rel (!%p13_p5) target bundleno = 1 (0x1), region = 75 }

</bundles_post_ra>
